<compile_context>
chip_gen: v5e
topology: v5e:2x2
jax: 0.10.0
libtpu: 0.0.40
codegen_flags: <defaults>
</compile_context>

<pallas_src>
import functools

import jax
import jax.numpy as jnp
import numpy as np
from jax import lax
from jax.experimental import pallas as pl
from jax.experimental.pallas import tpu as pltpu


def _round_up(x, m):
    return ((x + m - 1) // m) * m


def _conv3x3s2_kernel(w_ref, b_ref, x_ref, o_ref, *, C, OC, KH, KW, TILE_OH, OW_PAD):
    # w_ref: SMEM (OC*C*KH*KW,) f32   flattened conv weight (OIHW row-major)
    # b_ref: SMEM (OC,) f32
    # x_ref: VMEM (KW*2, C, H2P, OW_PAD)  x_ref[kw*2+hp, c, i, j] = x[c, 2*i+hp, 2*j+kw]
    # o_ref: VMEM (1, OC, TILE_OH, OW_PAD) one output row-tile of one image
    r0 = pl.multiple_of(pl.program_id(1) * TILE_OH, 8)
    acc = [jnp.zeros((TILE_OH, OW_PAD), jnp.float32) for _ in range(OC)]
    for kh in range(KH):
        hp, dh = kh % 2, kh // 2
        for kw in range(KW):
            s = kw * 2 + hp                       # which phase slab this tap reads
            for c in range(C):
                sl = x_ref[s, c, pl.ds(r0 + dh, TILE_OH), :]   # (TILE_OH, OW_PAD)
                for oc in range(OC):
                    w = w_ref[((oc * C + c) * KH + kh) * KW + kw]
                    acc[oc] = acc[oc] + w * sl
    for oc in range(OC):
        o_ref[0, oc, :, :] = (acc[oc] + b_ref[oc]).astype(o_ref.dtype)


def conv2d_pallas(x, weight, bias, *, stride=2, padding=0):
    """x: (N, C, H, W) f32; weight: (OC, C, KH, KW); bias: (OC,). Returns NCHW f32."""
    assert padding == 0 and stride == 2
    N, C, H, W = x.shape
    OC, IC, KH, KW = weight.shape
    assert IC == C
    OH = (H - KH) // stride + 1
    OW = (W - KW) // stride + 1

    # ---- tile / padding geometry -------------------------------------------
    OW_PAD = _round_up(OW, 128)                      # lane-dense output rows
    TILE_OH = _round_up(pl.cdiv(OH, 2), 8)           # 2 row tiles per image
    n_oh = pl.cdiv(OH, TILE_OH)
    OH_PAD = n_oh * TILE_OH
    H2 = _round_up(H, 2)
    rows_have = H2 // 2                              # rows per H-phase slab
    H2P = _round_up(max(OH_PAD + 1, rows_have), 8)   # rows stored per slab (no OOB)

    # ---- stride-2 phase split (cheap glue, ~x-sized; no im2col inflation) ---
    # slab[(kw, hp)][n, c, i, j] = x[n, c, 2*i + hp, 2*j + kw]
    xp = jnp.pad(x, ((0, 0), (0, 0), (0, H2 - H), (0, 0)))
    slabs = [xp[:, :, hp::2, kw:kw + stride * OW:stride]
             for kw in range(KW) for hp in range(2)]
    xprep = jnp.stack(slabs, axis=1)                 # (N, KW*2, C, rows_have, OW)
    xprep = jnp.pad(xprep, ((0, 0), (0, 0), (0, 0),
                            (0, H2P - rows_have), (0, OW_PAD - OW)))
    xprep = xprep.reshape(N * KW * 2, C, H2P, OW_PAD).astype(jnp.float32)

    w_flat = weight.reshape(-1).astype(jnp.float32)  # (OC*C*KH*KW,)
    b_flat = bias.reshape(-1).astype(jnp.float32)    # (OC,)

    kernel = functools.partial(_conv3x3s2_kernel, C=C, OC=OC, KH=KH, KW=KW,
                               TILE_OH=TILE_OH, OW_PAD=OW_PAD)

    cost = pl.CostEstimate(
        flops=2 * N * OH * OW * OC * C * KH * KW,        # real, unpadded work
        transcendentals=0,
        bytes_accessed=4 * (N * C * H * W + OC * C * KH * KW + OC + N * OC * OH * OW),
    )

    out_padded = pl.pallas_call(
        kernel,
        out_shape=jax.ShapeDtypeStruct((N, OC, OH_PAD, OW_PAD), jnp.float32),
        grid_spec=pltpu.PrefetchScalarGridSpec(
            num_scalar_prefetch=0,
            grid=(N, n_oh),
            in_specs=[
                pl.BlockSpec(memory_space=pltpu.MemorySpace.SMEM),   # weights (scalars)
                pl.BlockSpec(memory_space=pltpu.MemorySpace.SMEM),   # bias (scalars)
                # all 6 phase slabs of image n; resident across its row tiles
                pl.BlockSpec((KW * 2, C, H2P, OW_PAD), lambda n, i: (n, 0, 0, 0)),
            ],
            out_specs=pl.BlockSpec((1, OC, TILE_OH, OW_PAD),
                                   lambda n, i: (n, 0, i, 0)),
        ),
        compiler_params=pltpu.CompilerParams(
            dimension_semantics=("parallel", "parallel"),
            vmem_limit_bytes=32 * 1024 * 1024,
        ),
        cost_estimate=cost,
    )(w_flat, b_flat, xprep)

    # Valid region; already channel-major (NCHW) -> no transpose needed.
    return out_padded[:, :, :OH, :OW]


if __name__ == "__main__":
    key = jax.random.PRNGKey(0)
    k_x, k_w, k_b = jax.random.split(key, 3)

    # Shapes from the module spec: x1 = torch.randn(1, 3, 150, 185), Conv2d(3, 3, stride=2).
    N, C, H, W = 1, 3, 150, 185
    OC, KH, KW = 3, 3, 3
    stride = 2

    x = jax.random.normal(k_x, (N, C, H, W), dtype=jnp.float32)
    # PyTorch-style uniform init: U(-1/sqrt(fan_in), 1/sqrt(fan_in))
    fan_in = C * KH * KW
    bound = 1.0 / np.sqrt(fan_in)
    weight = jax.random.uniform(k_w, (OC, C, KH, KW), jnp.float32, -bound, bound)
    bias = jax.random.uniform(k_b, (OC,), jnp.float32, -bound, bound)

    conv_fn = jax.jit(conv2d_pallas)
    out = conv_fn(x, weight, bias)
    out = jax.block_until_ready(out)

    # Sanity check against XLA's conv (reference semantics of torch Conv2d, NCHW/OIHW).
    ref = lax.conv_general_dilated(
        x, weight, window_strides=(stride, stride), padding="VALID",
        dimension_numbers=("NCHW", "OIHW", "NCHW"),
    ) + bias.reshape(1, OC, 1, 1)
    np.testing.assert_allclose(np.asarray(out), np.asarray(ref), rtol=1e-4, atol=1e-4)

    print("KERNEL_OK")
</pallas_src>

<mosaic_0001>
module attributes {stable_mosaic.version = 11 : i64} {
  func.func @_conv3x3s2_kernel(%arg0: i32, %arg1: i32, %arg2: memref<81xf32, #tpu.memory_space<smem>>, %arg3: memref<3xf32, #tpu.memory_space<smem>>, %arg4: memref<6x3x88x128xf32, #tpu.memory_space<vmem>>, %arg5: memref<1x3x40x128xf32, #tpu.memory_space<vmem>>) attributes {dimension_semantics = [#tpu.dimension_semantics<parallel>, #tpu.dimension_semantics<parallel>], iteration_bounds = array<i64: 1, 2>, scalar_prefetch = 0 : i64, scratch_operands = 0 : i64, tpu.core_type = #tpu.core_type<tc>, window_params = [{transform_indices = @transform_0, window_bounds = array<i64: 81>}, {transform_indices = @transform_1, window_bounds = array<i64: 3>}, {transform_indices = @transform_2, window_bounds = array<i64: 6, 3, 88, 128>}, {transform_indices = @transform_3, window_bounds = array<i64: 1, 3, 40, 128>}]} {
    %c40_i32 = arith.constant 40 : i32
    %0 = arith.muli %arg1, %c40_i32 : i32
    %1 = tpu.assume_multiple %0, 8 : i32
    %cst = arith.constant 0.000000e+00 : f32
    %2 = vector.broadcast %cst : f32 to vector<40x128xf32>
    %cst_0 = arith.constant 0.000000e+00 : f32
    %3 = vector.broadcast %cst_0 : f32 to vector<40x128xf32>
    %cst_1 = arith.constant 0.000000e+00 : f32
    %4 = vector.broadcast %cst_1 : f32 to vector<40x128xf32>
    %c0_i32 = arith.constant 0 : i32
    %5 = arith.addi %1, %c0_i32 : i32
    %c0 = arith.constant 0 : index
    %c0_2 = arith.constant 0 : index
    %6 = arith.index_cast %5 : i32 to index
    %c0_3 = arith.constant 0 : index
    %7 = vector.load %arg4[%c0, %c0_2, %6, %c0_3] : memref<6x3x88x128xf32, #tpu.memory_space<vmem>>, vector<1x1x40x128xf32>
    %8 = vector.shape_cast %7 : vector<1x1x40x128xf32> to vector<40x128xf32>
    %c0_4 = arith.constant 0 : index
    %9 = memref.load %arg2[%c0_4] : memref<81xf32, #tpu.memory_space<smem>>
    %10 = vector.broadcast %9 : f32 to vector<40x128xf32>
    %11 = arith.mulf %10, %8 : vector<40x128xf32>
    %12 = arith.addf %2, %11 : vector<40x128xf32>
    %c27 = arith.constant 27 : index
    %13 = memref.load %arg2[%c27] : memref<81xf32, #tpu.memory_space<smem>>
    %14 = vector.broadcast %13 : f32 to vector<40x128xf32>
    %15 = arith.mulf %14, %8 : vector<40x128xf32>
    %16 = arith.addf %3, %15 : vector<40x128xf32>
    %c54 = arith.constant 54 : index
    %17 = memref.load %arg2[%c54] : memref<81xf32, #tpu.memory_space<smem>>
    %18 = vector.broadcast %17 : f32 to vector<40x128xf32>
    %19 = arith.mulf %18, %8 : vector<40x128xf32>
    %20 = arith.addf %4, %19 : vector<40x128xf32>
    %c0_i32_5 = arith.constant 0 : i32
    %21 = arith.addi %1, %c0_i32_5 : i32
    %c0_6 = arith.constant 0 : index
    %c1 = arith.constant 1 : index
    %22 = arith.index_cast %21 : i32 to index
    %c0_7 = arith.constant 0 : index
    %23 = vector.load %arg4[%c0_6, %c1, %22, %c0_7] : memref<6x3x88x128xf32, #tpu.memory_space<vmem>>, vector<1x1x40x128xf32>
    %24 = vector.shape_cast %23 : vector<1x1x40x128xf32> to vector<40x128xf32>
    %c9 = arith.constant 9 : index
    %25 = memref.load %arg2[%c9] : memref<81xf32, #tpu.memory_space<smem>>
    %26 = vector.broadcast %25 : f32 to vector<40x128xf32>
    %27 = arith.mulf %26, %24 : vector<40x128xf32>
    %28 = arith.addf %12, %27 : vector<40x128xf32>
    %c36 = arith.constant 36 : index
    %29 = memref.load %arg2[%c36] : memref<81xf32, #tpu.memory_space<smem>>
    %30 = vector.broadcast %29 : f32 to vector<40x128xf32>
    %31 = arith.mulf %30, %24 : vector<40x128xf32>
    %32 = arith.addf %16, %31 : vector<40x128xf32>
    %c63 = arith.constant 63 : index
    %33 = memref.load %arg2[%c63] : memref<81xf32, #tpu.memory_space<smem>>
    %34 = vector.broadcast %33 : f32 to vector<40x128xf32>
    %35 = arith.mulf %34, %24 : vector<40x128xf32>
    %36 = arith.addf %20, %35 : vector<40x128xf32>
    %c0_i32_8 = arith.constant 0 : i32
    %37 = arith.addi %1, %c0_i32_8 : i32
    %c0_9 = arith.constant 0 : index
    %c2 = arith.constant 2 : index
    %38 = arith.index_cast %37 : i32 to index
    %c0_10 = arith.constant 0 : index
    %39 = vector.load %arg4[%c0_9, %c2, %38, %c0_10] : memref<6x3x88x128xf32, #tpu.memory_space<vmem>>, vector<1x1x40x128xf32>
    %40 = vector.shape_cast %39 : vector<1x1x40x128xf32> to vector<40x128xf32>
    %c18 = arith.constant 18 : index
    %41 = memref.load %arg2[%c18] : memref<81xf32, #tpu.memory_space<smem>>
    %42 = vector.broadcast %41 : f32 to vector<40x128xf32>
    %43 = arith.mulf %42, %40 : vector<40x128xf32>
    %44 = arith.addf %28, %43 : vector<40x128xf32>
    %c45 = arith.constant 45 : index
    %45 = memref.load %arg2[%c45] : memref<81xf32, #tpu.memory_space<smem>>
    %46 = vector.broadcast %45 : f32 to vector<40x128xf32>
    %47 = arith.mulf %46, %40 : vector<40x128xf32>
    %48 = arith.addf %32, %47 : vector<40x128xf32>
    %c72 = arith.constant 72 : index
    %49 = memref.load %arg2[%c72] : memref<81xf32, #tpu.memory_space<smem>>
    %50 = vector.broadcast %49 : f32 to vector<40x128xf32>
    %51 = arith.mulf %50, %40 : vector<40x128xf32>
    %52 = arith.addf %36, %51 : vector<40x128xf32>
    %c0_i32_11 = arith.constant 0 : i32
    %53 = arith.addi %1, %c0_i32_11 : i32
    %c2_12 = arith.constant 2 : index
    %c0_13 = arith.constant 0 : index
    %54 = arith.index_cast %53 : i32 to index
    %c0_14 = arith.constant 0 : index
    %55 = vector.load %arg4[%c2_12, %c0_13, %54, %c0_14] : memref<6x3x88x128xf32, #tpu.memory_space<vmem>>, vector<1x1x40x128xf32>
    %56 = vector.shape_cast %55 : vector<1x1x40x128xf32> to vector<40x128xf32>
    %c1_15 = arith.constant 1 : index
    %57 = memref.load %arg2[%c1_15] : memref<81xf32, #tpu.memory_space<smem>>
    %58 = vector.broadcast %57 : f32 to vector<40x128xf32>
    %59 = arith.mulf %58, %56 : vector<40x128xf32>
    %60 = arith.addf %44, %59 : vector<40x128xf32>
    %c28 = arith.constant 28 : index
    %61 = memref.load %arg2[%c28] : memref<81xf32, #tpu.memory_space<smem>>
    %62 = vector.broadcast %61 : f32 to vector<40x128xf32>
    %63 = arith.mulf %62, %56 : vector<40x128xf32>
    %64 = arith.addf %48, %63 : vector<40x128xf32>
    %c55 = arith.constant 55 : index
    %65 = memref.load %arg2[%c55] : memref<81xf32, #tpu.memory_space<smem>>
    %66 = vector.broadcast %65 : f32 to vector<40x128xf32>
    %67 = arith.mulf %66, %56 : vector<40x128xf32>
    %68 = arith.addf %52, %67 : vector<40x128xf32>
    %c0_i32_16 = arith.constant 0 : i32
    %69 = arith.addi %1, %c0_i32_16 : i32
    %c2_17 = arith.constant 2 : index
    %c1_18 = arith.constant 1 : index
    %70 = arith.index_cast %69 : i32 to index
    %c0_19 = arith.constant 0 : index
    %71 = vector.load %arg4[%c2_17, %c1_18, %70, %c0_19] : memref<6x3x88x128xf32, #tpu.memory_space<vmem>>, vector<1x1x40x128xf32>
    %72 = vector.shape_cast %71 : vector<1x1x40x128xf32> to vector<40x128xf32>
    %c10 = arith.constant 10 : index
    %73 = memref.load %arg2[%c10] : memref<81xf32, #tpu.memory_space<smem>>
    %74 = vector.broadcast %73 : f32 to vector<40x128xf32>
    %75 = arith.mulf %74, %72 : vector<40x128xf32>
    %76 = arith.addf %60, %75 : vector<40x128xf32>
    %c37 = arith.constant 37 : index
    %77 = memref.load %arg2[%c37] : memref<81xf32, #tpu.memory_space<smem>>
    %78 = vector.broadcast %77 : f32 to vector<40x128xf32>
    %79 = arith.mulf %78, %72 : vector<40x128xf32>
    %80 = arith.addf %64, %79 : vector<40x128xf32>
    %c64 = arith.constant 64 : index
    %81 = memref.load %arg2[%c64] : memref<81xf32, #tpu.memory_space<smem>>
    %82 = vector.broadcast %81 : f32 to vector<40x128xf32>
    %83 = arith.mulf %82, %72 : vector<40x128xf32>
    %84 = arith.addf %68, %83 : vector<40x128xf32>
    %c0_i32_20 = arith.constant 0 : i32
    %85 = arith.addi %1, %c0_i32_20 : i32
    %c2_21 = arith.constant 2 : index
    %c2_22 = arith.constant 2 : index
    %86 = arith.index_cast %85 : i32 to index
    %c0_23 = arith.constant 0 : index
    %87 = vector.load %arg4[%c2_21, %c2_22, %86, %c0_23] : memref<6x3x88x128xf32, #tpu.memory_space<vmem>>, vector<1x1x40x128xf32>
    %88 = vector.shape_cast %87 : vector<1x1x40x128xf32> to vector<40x128xf32>
    %c19 = arith.constant 19 : index
    %89 = memref.load %arg2[%c19] : memref<81xf32, #tpu.memory_space<smem>>
    %90 = vector.broadcast %89 : f32 to vector<40x128xf32>
    %91 = arith.mulf %90, %88 : vector<40x128xf32>
    %92 = arith.addf %76, %91 : vector<40x128xf32>
    %c46 = arith.constant 46 : index
    %93 = memref.load %arg2[%c46] : memref<81xf32, #tpu.memory_space<smem>>
    %94 = vector.broadcast %93 : f32 to vector<40x128xf32>
    %95 = arith.mulf %94, %88 : vector<40x128xf32>
    %96 = arith.addf %80, %95 : vector<40x128xf32>
    %c73 = arith.constant 73 : index
    %97 = memref.load %arg2[%c73] : memref<81xf32, #tpu.memory_space<smem>>
    %98 = vector.broadcast %97 : f32 to vector<40x128xf32>
    %99 = arith.mulf %98, %88 : vector<40x128xf32>
    %100 = arith.addf %84, %99 : vector<40x128xf32>
    %c0_i32_24 = arith.constant 0 : i32
    %101 = arith.addi %1, %c0_i32_24 : i32
    %c4 = arith.constant 4 : index
    %c0_25 = arith.constant 0 : index
    %102 = arith.index_cast %101 : i32 to index
    %c0_26 = arith.constant 0 : index
    %103 = vector.load %arg4[%c4, %c0_25, %102, %c0_26] : memref<6x3x88x128xf32, #tpu.memory_space<vmem>>, vector<1x1x40x128xf32>
    %104 = vector.shape_cast %103 : vector<1x1x40x128xf32> to vector<40x128xf32>
    %c2_27 = arith.constant 2 : index
    %105 = memref.load %arg2[%c2_27] : memref<81xf32, #tpu.memory_space<smem>>
    %106 = vector.broadcast %105 : f32 to vector<40x128xf32>
    %107 = arith.mulf %106, %104 : vector<40x128xf32>
    %108 = arith.addf %92, %107 : vector<40x128xf32>
    %c29 = arith.constant 29 : index
    %109 = memref.load %arg2[%c29] : memref<81xf32, #tpu.memory_space<smem>>
    %110 = vector.broadcast %109 : f32 to vector<40x128xf32>
    %111 = arith.mulf %110, %104 : vector<40x128xf32>
    %112 = arith.addf %96, %111 : vector<40x128xf32>
    %c56 = arith.constant 56 : index
    %113 = memref.load %arg2[%c56] : memref<81xf32, #tpu.memory_space<smem>>
    %114 = vector.broadcast %113 : f32 to vector<40x128xf32>
    %115 = arith.mulf %114, %104 : vector<40x128xf32>
    %116 = arith.addf %100, %115 : vector<40x128xf32>
    %c0_i32_28 = arith.constant 0 : i32
    %117 = arith.addi %1, %c0_i32_28 : i32
    %c4_29 = arith.constant 4 : index
    %c1_30 = arith.constant 1 : index
    %118 = arith.index_cast %117 : i32 to index
    %c0_31 = arith.constant 0 : index
    %119 = vector.load %arg4[%c4_29, %c1_30, %118, %c0_31] : memref<6x3x88x128xf32, #tpu.memory_space<vmem>>, vector<1x1x40x128xf32>
    %120 = vector.shape_cast %119 : vector<1x1x40x128xf32> to vector<40x128xf32>
    %c11 = arith.constant 11 : index
    %121 = memref.load %arg2[%c11] : memref<81xf32, #tpu.memory_space<smem>>
    %122 = vector.broadcast %121 : f32 to vector<40x128xf32>
    %123 = arith.mulf %122, %120 : vector<40x128xf32>
    %124 = arith.addf %108, %123 : vector<40x128xf32>
    %c38 = arith.constant 38 : index
    %125 = memref.load %arg2[%c38] : memref<81xf32, #tpu.memory_space<smem>>
    %126 = vector.broadcast %125 : f32 to vector<40x128xf32>
    %127 = arith.mulf %126, %120 : vector<40x128xf32>
    %128 = arith.addf %112, %127 : vector<40x128xf32>
    %c65 = arith.constant 65 : index
    %129 = memref.load %arg2[%c65] : memref<81xf32, #tpu.memory_space<smem>>
    %130 = vector.broadcast %129 : f32 to vector<40x128xf32>
    %131 = arith.mulf %130, %120 : vector<40x128xf32>
    %132 = arith.addf %116, %131 : vector<40x128xf32>
    %c0_i32_32 = arith.constant 0 : i32
    %133 = arith.addi %1, %c0_i32_32 : i32
    %c4_33 = arith.constant 4 : index
    %c2_34 = arith.constant 2 : index
    %134 = arith.index_cast %133 : i32 to index
    %c0_35 = arith.constant 0 : index
    %135 = vector.load %arg4[%c4_33, %c2_34, %134, %c0_35] : memref<6x3x88x128xf32, #tpu.memory_space<vmem>>, vector<1x1x40x128xf32>
    %136 = vector.shape_cast %135 : vector<1x1x40x128xf32> to vector<40x128xf32>
    %c20 = arith.constant 20 : index
    %137 = memref.load %arg2[%c20] : memref<81xf32, #tpu.memory_space<smem>>
    %138 = vector.broadcast %137 : f32 to vector<40x128xf32>
    %139 = arith.mulf %138, %136 : vector<40x128xf32>
    %140 = arith.addf %124, %139 : vector<40x128xf32>
    %c47 = arith.constant 47 : index
    %141 = memref.load %arg2[%c47] : memref<81xf32, #tpu.memory_space<smem>>
    %142 = vector.broadcast %141 : f32 to vector<40x128xf32>
    %143 = arith.mulf %142, %136 : vector<40x128xf32>
    %144 = arith.addf %128, %143 : vector<40x128xf32>
    %c74 = arith.constant 74 : index
    %145 = memref.load %arg2[%c74] : memref<81xf32, #tpu.memory_space<smem>>
    %146 = vector.broadcast %145 : f32 to vector<40x128xf32>
    %147 = arith.mulf %146, %136 : vector<40x128xf32>
    %148 = arith.addf %132, %147 : vector<40x128xf32>
    %c0_i32_36 = arith.constant 0 : i32
    %149 = arith.addi %1, %c0_i32_36 : i32
    %c1_37 = arith.constant 1 : index
    %c0_38 = arith.constant 0 : index
    %150 = arith.index_cast %149 : i32 to index
    %c0_39 = arith.constant 0 : index
    %151 = vector.load %arg4[%c1_37, %c0_38, %150, %c0_39] : memref<6x3x88x128xf32, #tpu.memory_space<vmem>>, vector<1x1x40x128xf32>
    %152 = vector.shape_cast %151 : vector<1x1x40x128xf32> to vector<40x128xf32>
    %c3 = arith.constant 3 : index
    %153 = memref.load %arg2[%c3] : memref<81xf32, #tpu.memory_space<smem>>
    %154 = vector.broadcast %153 : f32 to vector<40x128xf32>
    %155 = arith.mulf %154, %152 : vector<40x128xf32>
    %156 = arith.addf %140, %155 : vector<40x128xf32>
    %c30 = arith.constant 30 : index
    %157 = memref.load %arg2[%c30] : memref<81xf32, #tpu.memory_space<smem>>
    %158 = vector.broadcast %157 : f32 to vector<40x128xf32>
    %159 = arith.mulf %158, %152 : vector<40x128xf32>
    %160 = arith.addf %144, %159 : vector<40x128xf32>
    %c57 = arith.constant 57 : index
    %161 = memref.load %arg2[%c57] : memref<81xf32, #tpu.memory_space<smem>>
    %162 = vector.broadcast %161 : f32 to vector<40x128xf32>
    %163 = arith.mulf %162, %152 : vector<40x128xf32>
    %164 = arith.addf %148, %163 : vector<40x128xf32>
    %c0_i32_40 = arith.constant 0 : i32
    %165 = arith.addi %1, %c0_i32_40 : i32
    %c1_41 = arith.constant 1 : index
    %c1_42 = arith.constant 1 : index
    %166 = arith.index_cast %165 : i32 to index
    %c0_43 = arith.constant 0 : index
    %167 = vector.load %arg4[%c1_41, %c1_42, %166, %c0_43] : memref<6x3x88x128xf32, #tpu.memory_space<vmem>>, vector<1x1x40x128xf32>
    %168 = vector.shape_cast %167 : vector<1x1x40x128xf32> to vector<40x128xf32>
    %c12 = arith.constant 12 : index
    %169 = memref.load %arg2[%c12] : memref<81xf32, #tpu.memory_space<smem>>
    %170 = vector.broadcast %169 : f32 to vector<40x128xf32>
    %171 = arith.mulf %170, %168 : vector<40x128xf32>
    %172 = arith.addf %156, %171 : vector<40x128xf32>
    %c39 = arith.constant 39 : index
    %173 = memref.load %arg2[%c39] : memref<81xf32, #tpu.memory_space<smem>>
    %174 = vector.broadcast %173 : f32 to vector<40x128xf32>
    %175 = arith.mulf %174, %168 : vector<40x128xf32>
    %176 = arith.addf %160, %175 : vector<40x128xf32>
    %c66 = arith.constant 66 : index
    %177 = memref.load %arg2[%c66] : memref<81xf32, #tpu.memory_space<smem>>
    %178 = vector.broadcast %177 : f32 to vector<40x128xf32>
    %179 = arith.mulf %178, %168 : vector<40x128xf32>
    %180 = arith.addf %164, %179 : vector<40x128xf32>
    %c0_i32_44 = arith.constant 0 : i32
    %181 = arith.addi %1, %c0_i32_44 : i32
    %c1_45 = arith.constant 1 : index
    %c2_46 = arith.constant 2 : index
    %182 = arith.index_cast %181 : i32 to index
    %c0_47 = arith.constant 0 : index
    %183 = vector.load %arg4[%c1_45, %c2_46, %182, %c0_47] : memref<6x3x88x128xf32, #tpu.memory_space<vmem>>, vector<1x1x40x128xf32>
    %184 = vector.shape_cast %183 : vector<1x1x40x128xf32> to vector<40x128xf32>
    %c21 = arith.constant 21 : index
    %185 = memref.load %arg2[%c21] : memref<81xf32, #tpu.memory_space<smem>>
    %186 = vector.broadcast %185 : f32 to vector<40x128xf32>
    %187 = arith.mulf %186, %184 : vector<40x128xf32>
    %188 = arith.addf %172, %187 : vector<40x128xf32>
    %c48 = arith.constant 48 : index
    %189 = memref.load %arg2[%c48] : memref<81xf32, #tpu.memory_space<smem>>
    %190 = vector.broadcast %189 : f32 to vector<40x128xf32>
    %191 = arith.mulf %190, %184 : vector<40x128xf32>
    %192 = arith.addf %176, %191 : vector<40x128xf32>
    %c75 = arith.constant 75 : index
    %193 = memref.load %arg2[%c75] : memref<81xf32, #tpu.memory_space<smem>>
    %194 = vector.broadcast %193 : f32 to vector<40x128xf32>
    %195 = arith.mulf %194, %184 : vector<40x128xf32>
    %196 = arith.addf %180, %195 : vector<40x128xf32>
    %c0_i32_48 = arith.constant 0 : i32
    %197 = arith.addi %1, %c0_i32_48 : i32
    %c3_49 = arith.constant 3 : index
    %c0_50 = arith.constant 0 : index
    %198 = arith.index_cast %197 : i32 to index
    %c0_51 = arith.constant 0 : index
    %199 = vector.load %arg4[%c3_49, %c0_50, %198, %c0_51] : memref<6x3x88x128xf32, #tpu.memory_space<vmem>>, vector<1x1x40x128xf32>
    %200 = vector.shape_cast %199 : vector<1x1x40x128xf32> to vector<40x128xf32>
    %c4_52 = arith.constant 4 : index
    %201 = memref.load %arg2[%c4_52] : memref<81xf32, #tpu.memory_space<smem>>
    %202 = vector.broadcast %201 : f32 to vector<40x128xf32>
    %203 = arith.mulf %202, %200 : vector<40x128xf32>
    %204 = arith.addf %188, %203 : vector<40x128xf32>
    %c31 = arith.constant 31 : index
    %205 = memref.load %arg2[%c31] : memref<81xf32, #tpu.memory_space<smem>>
    %206 = vector.broadcast %205 : f32 to vector<40x128xf32>
    %207 = arith.mulf %206, %200 : vector<40x128xf32>
    %208 = arith.addf %192, %207 : vector<40x128xf32>
    %c58 = arith.constant 58 : index
    %209 = memref.load %arg2[%c58] : memref<81xf32, #tpu.memory_space<smem>>
    %210 = vector.broadcast %209 : f32 to vector<40x128xf32>
    %211 = arith.mulf %210, %200 : vector<40x128xf32>
    %212 = arith.addf %196, %211 : vector<40x128xf32>
    %c0_i32_53 = arith.constant 0 : i32
    %213 = arith.addi %1, %c0_i32_53 : i32
    %c3_54 = arith.constant 3 : index
    %c1_55 = arith.constant 1 : index
    %214 = arith.index_cast %213 : i32 to index
    %c0_56 = arith.constant 0 : index
    %215 = vector.load %arg4[%c3_54, %c1_55, %214, %c0_56] : memref<6x3x88x128xf32, #tpu.memory_space<vmem>>, vector<1x1x40x128xf32>
    %216 = vector.shape_cast %215 : vector<1x1x40x128xf32> to vector<40x128xf32>
    %c13 = arith.constant 13 : index
    %217 = memref.load %arg2[%c13] : memref<81xf32, #tpu.memory_space<smem>>
    %218 = vector.broadcast %217 : f32 to vector<40x128xf32>
    %219 = arith.mulf %218, %216 : vector<40x128xf32>
    %220 = arith.addf %204, %219 : vector<40x128xf32>
    %c40 = arith.constant 40 : index
    %221 = memref.load %arg2[%c40] : memref<81xf32, #tpu.memory_space<smem>>
    %222 = vector.broadcast %221 : f32 to vector<40x128xf32>
    %223 = arith.mulf %222, %216 : vector<40x128xf32>
    %224 = arith.addf %208, %223 : vector<40x128xf32>
    %c67 = arith.constant 67 : index
    %225 = memref.load %arg2[%c67] : memref<81xf32, #tpu.memory_space<smem>>
    %226 = vector.broadcast %225 : f32 to vector<40x128xf32>
    %227 = arith.mulf %226, %216 : vector<40x128xf32>
    %228 = arith.addf %212, %227 : vector<40x128xf32>
    %c0_i32_57 = arith.constant 0 : i32
    %229 = arith.addi %1, %c0_i32_57 : i32
    %c3_58 = arith.constant 3 : index
    %c2_59 = arith.constant 2 : index
    %230 = arith.index_cast %229 : i32 to index
    %c0_60 = arith.constant 0 : index
    %231 = vector.load %arg4[%c3_58, %c2_59, %230, %c0_60] : memref<6x3x88x128xf32, #tpu.memory_space<vmem>>, vector<1x1x40x128xf32>
    %232 = vector.shape_cast %231 : vector<1x1x40x128xf32> to vector<40x128xf32>
    %c22 = arith.constant 22 : index
    %233 = memref.load %arg2[%c22] : memref<81xf32, #tpu.memory_space<smem>>
    %234 = vector.broadcast %233 : f32 to vector<40x128xf32>
    %235 = arith.mulf %234, %232 : vector<40x128xf32>
    %236 = arith.addf %220, %235 : vector<40x128xf32>
    %c49 = arith.constant 49 : index
    %237 = memref.load %arg2[%c49] : memref<81xf32, #tpu.memory_space<smem>>
    %238 = vector.broadcast %237 : f32 to vector<40x128xf32>
    %239 = arith.mulf %238, %232 : vector<40x128xf32>
    %240 = arith.addf %224, %239 : vector<40x128xf32>
    %c76 = arith.constant 76 : index
    %241 = memref.load %arg2[%c76] : memref<81xf32, #tpu.memory_space<smem>>
    %242 = vector.broadcast %241 : f32 to vector<40x128xf32>
    %243 = arith.mulf %242, %232 : vector<40x128xf32>
    %244 = arith.addf %228, %243 : vector<40x128xf32>
    %c0_i32_61 = arith.constant 0 : i32
    %245 = arith.addi %1, %c0_i32_61 : i32
    %c5 = arith.constant 5 : index
    %c0_62 = arith.constant 0 : index
    %246 = arith.index_cast %245 : i32 to index
    %c0_63 = arith.constant 0 : index
    %247 = vector.load %arg4[%c5, %c0_62, %246, %c0_63] : memref<6x3x88x128xf32, #tpu.memory_space<vmem>>, vector<1x1x40x128xf32>
    %248 = vector.shape_cast %247 : vector<1x1x40x128xf32> to vector<40x128xf32>
    %c5_64 = arith.constant 5 : index
    %249 = memref.load %arg2[%c5_64] : memref<81xf32, #tpu.memory_space<smem>>
    %250 = vector.broadcast %249 : f32 to vector<40x128xf32>
    %251 = arith.mulf %250, %248 : vector<40x128xf32>
    %252 = arith.addf %236, %251 : vector<40x128xf32>
    %c32 = arith.constant 32 : index
    %253 = memref.load %arg2[%c32] : memref<81xf32, #tpu.memory_space<smem>>
    %254 = vector.broadcast %253 : f32 to vector<40x128xf32>
    %255 = arith.mulf %254, %248 : vector<40x128xf32>
    %256 = arith.addf %240, %255 : vector<40x128xf32>
    %c59 = arith.constant 59 : index
    %257 = memref.load %arg2[%c59] : memref<81xf32, #tpu.memory_space<smem>>
    %258 = vector.broadcast %257 : f32 to vector<40x128xf32>
    %259 = arith.mulf %258, %248 : vector<40x128xf32>
    %260 = arith.addf %244, %259 : vector<40x128xf32>
    %c0_i32_65 = arith.constant 0 : i32
    %261 = arith.addi %1, %c0_i32_65 : i32
    %c5_66 = arith.constant 5 : index
    %c1_67 = arith.constant 1 : index
    %262 = arith.index_cast %261 : i32 to index
    %c0_68 = arith.constant 0 : index
    %263 = vector.load %arg4[%c5_66, %c1_67, %262, %c0_68] : memref<6x3x88x128xf32, #tpu.memory_space<vmem>>, vector<1x1x40x128xf32>
    %264 = vector.shape_cast %263 : vector<1x1x40x128xf32> to vector<40x128xf32>
    %c14 = arith.constant 14 : index
    %265 = memref.load %arg2[%c14] : memref<81xf32, #tpu.memory_space<smem>>
    %266 = vector.broadcast %265 : f32 to vector<40x128xf32>
    %267 = arith.mulf %266, %264 : vector<40x128xf32>
    %268 = arith.addf %252, %267 : vector<40x128xf32>
    %c41 = arith.constant 41 : index
    %269 = memref.load %arg2[%c41] : memref<81xf32, #tpu.memory_space<smem>>
    %270 = vector.broadcast %269 : f32 to vector<40x128xf32>
    %271 = arith.mulf %270, %264 : vector<40x128xf32>
    %272 = arith.addf %256, %271 : vector<40x128xf32>
    %c68 = arith.constant 68 : index
    %273 = memref.load %arg2[%c68] : memref<81xf32, #tpu.memory_space<smem>>
    %274 = vector.broadcast %273 : f32 to vector<40x128xf32>
    %275 = arith.mulf %274, %264 : vector<40x128xf32>
    %276 = arith.addf %260, %275 : vector<40x128xf32>
    %c0_i32_69 = arith.constant 0 : i32
    %277 = arith.addi %1, %c0_i32_69 : i32
    %c5_70 = arith.constant 5 : index
    %c2_71 = arith.constant 2 : index
    %278 = arith.index_cast %277 : i32 to index
    %c0_72 = arith.constant 0 : index
    %279 = vector.load %arg4[%c5_70, %c2_71, %278, %c0_72] : memref<6x3x88x128xf32, #tpu.memory_space<vmem>>, vector<1x1x40x128xf32>
    %280 = vector.shape_cast %279 : vector<1x1x40x128xf32> to vector<40x128xf32>
    %c23 = arith.constant 23 : index
    %281 = memref.load %arg2[%c23] : memref<81xf32, #tpu.memory_space<smem>>
    %282 = vector.broadcast %281 : f32 to vector<40x128xf32>
    %283 = arith.mulf %282, %280 : vector<40x128xf32>
    %284 = arith.addf %268, %283 : vector<40x128xf32>
    %c50 = arith.constant 50 : index
    %285 = memref.load %arg2[%c50] : memref<81xf32, #tpu.memory_space<smem>>
    %286 = vector.broadcast %285 : f32 to vector<40x128xf32>
    %287 = arith.mulf %286, %280 : vector<40x128xf32>
    %288 = arith.addf %272, %287 : vector<40x128xf32>
    %c77 = arith.constant 77 : index
    %289 = memref.load %arg2[%c77] : memref<81xf32, #tpu.memory_space<smem>>
    %290 = vector.broadcast %289 : f32 to vector<40x128xf32>
    %291 = arith.mulf %290, %280 : vector<40x128xf32>
    %292 = arith.addf %276, %291 : vector<40x128xf32>
    %c1_i32 = arith.constant 1 : i32
    %293 = arith.addi %1, %c1_i32 : i32
    %c0_73 = arith.constant 0 : index
    %c0_74 = arith.constant 0 : index
    %294 = arith.index_cast %293 : i32 to index
    %c0_75 = arith.constant 0 : index
    %295 = vector.load %arg4[%c0_73, %c0_74, %294, %c0_75] : memref<6x3x88x128xf32, #tpu.memory_space<vmem>>, vector<1x1x40x128xf32>
    %296 = vector.shape_cast %295 : vector<1x1x40x128xf32> to vector<40x128xf32>
    %c6 = arith.constant 6 : index
    %297 = memref.load %arg2[%c6] : memref<81xf32, #tpu.memory_space<smem>>
    %298 = vector.broadcast %297 : f32 to vector<40x128xf32>
    %299 = arith.mulf %298, %296 : vector<40x128xf32>
    %300 = arith.addf %284, %299 : vector<40x128xf32>
    %c33 = arith.constant 33 : index
    %301 = memref.load %arg2[%c33] : memref<81xf32, #tpu.memory_space<smem>>
    %302 = vector.broadcast %301 : f32 to vector<40x128xf32>
    %303 = arith.mulf %302, %296 : vector<40x128xf32>
    %304 = arith.addf %288, %303 : vector<40x128xf32>
    %c60 = arith.constant 60 : index
    %305 = memref.load %arg2[%c60] : memref<81xf32, #tpu.memory_space<smem>>
    %306 = vector.broadcast %305 : f32 to vector<40x128xf32>
    %307 = arith.mulf %306, %296 : vector<40x128xf32>
    %308 = arith.addf %292, %307 : vector<40x128xf32>
    %c1_i32_76 = arith.constant 1 : i32
    %309 = arith.addi %1, %c1_i32_76 : i32
    %c0_77 = arith.constant 0 : index
    %c1_78 = arith.constant 1 : index
    %310 = arith.index_cast %309 : i32 to index
    %c0_79 = arith.constant 0 : index
    %311 = vector.load %arg4[%c0_77, %c1_78, %310, %c0_79] : memref<6x3x88x128xf32, #tpu.memory_space<vmem>>, vector<1x1x40x128xf32>
    %312 = vector.shape_cast %311 : vector<1x1x40x128xf32> to vector<40x128xf32>
    %c15 = arith.constant 15 : index
    %313 = memref.load %arg2[%c15] : memref<81xf32, #tpu.memory_space<smem>>
    %314 = vector.broadcast %313 : f32 to vector<40x128xf32>
    %315 = arith.mulf %314, %312 : vector<40x128xf32>
    %316 = arith.addf %300, %315 : vector<40x128xf32>
    %c42 = arith.constant 42 : index
    %317 = memref.load %arg2[%c42] : memref<81xf32, #tpu.memory_space<smem>>
    %318 = vector.broadcast %317 : f32 to vector<40x128xf32>
    %319 = arith.mulf %318, %312 : vector<40x128xf32>
    %320 = arith.addf %304, %319 : vector<40x128xf32>
    %c69 = arith.constant 69 : index
    %321 = memref.load %arg2[%c69] : memref<81xf32, #tpu.memory_space<smem>>
    %322 = vector.broadcast %321 : f32 to vector<40x128xf32>
    %323 = arith.mulf %322, %312 : vector<40x128xf32>
    %324 = arith.addf %308, %323 : vector<40x128xf32>
    %c1_i32_80 = arith.constant 1 : i32
    %325 = arith.addi %1, %c1_i32_80 : i32
    %c0_81 = arith.constant 0 : index
    %c2_82 = arith.constant 2 : index
    %326 = arith.index_cast %325 : i32 to index
    %c0_83 = arith.constant 0 : index
    %327 = vector.load %arg4[%c0_81, %c2_82, %326, %c0_83] : memref<6x3x88x128xf32, #tpu.memory_space<vmem>>, vector<1x1x40x128xf32>
    %328 = vector.shape_cast %327 : vector<1x1x40x128xf32> to vector<40x128xf32>
    %c24 = arith.constant 24 : index
    %329 = memref.load %arg2[%c24] : memref<81xf32, #tpu.memory_space<smem>>
    %330 = vector.broadcast %329 : f32 to vector<40x128xf32>
    %331 = arith.mulf %330, %328 : vector<40x128xf32>
    %332 = arith.addf %316, %331 : vector<40x128xf32>
    %c51 = arith.constant 51 : index
    %333 = memref.load %arg2[%c51] : memref<81xf32, #tpu.memory_space<smem>>
    %334 = vector.broadcast %333 : f32 to vector<40x128xf32>
    %335 = arith.mulf %334, %328 : vector<40x128xf32>
    %336 = arith.addf %320, %335 : vector<40x128xf32>
    %c78 = arith.constant 78 : index
    %337 = memref.load %arg2[%c78] : memref<81xf32, #tpu.memory_space<smem>>
    %338 = vector.broadcast %337 : f32 to vector<40x128xf32>
    %339 = arith.mulf %338, %328 : vector<40x128xf32>
    %340 = arith.addf %324, %339 : vector<40x128xf32>
    %c1_i32_84 = arith.constant 1 : i32
    %341 = arith.addi %1, %c1_i32_84 : i32
    %c2_85 = arith.constant 2 : index
    %c0_86 = arith.constant 0 : index
    %342 = arith.index_cast %341 : i32 to index
    %c0_87 = arith.constant 0 : index
    %343 = vector.load %arg4[%c2_85, %c0_86, %342, %c0_87] : memref<6x3x88x128xf32, #tpu.memory_space<vmem>>, vector<1x1x40x128xf32>
    %344 = vector.shape_cast %343 : vector<1x1x40x128xf32> to vector<40x128xf32>
    %c7 = arith.constant 7 : index
    %345 = memref.load %arg2[%c7] : memref<81xf32, #tpu.memory_space<smem>>
    %346 = vector.broadcast %345 : f32 to vector<40x128xf32>
    %347 = arith.mulf %346, %344 : vector<40x128xf32>
    %348 = arith.addf %332, %347 : vector<40x128xf32>
    %c34 = arith.constant 34 : index
    %349 = memref.load %arg2[%c34] : memref<81xf32, #tpu.memory_space<smem>>
    %350 = vector.broadcast %349 : f32 to vector<40x128xf32>
    %351 = arith.mulf %350, %344 : vector<40x128xf32>
    %352 = arith.addf %336, %351 : vector<40x128xf32>
    %c61 = arith.constant 61 : index
    %353 = memref.load %arg2[%c61] : memref<81xf32, #tpu.memory_space<smem>>
    %354 = vector.broadcast %353 : f32 to vector<40x128xf32>
    %355 = arith.mulf %354, %344 : vector<40x128xf32>
    %356 = arith.addf %340, %355 : vector<40x128xf32>
    %c1_i32_88 = arith.constant 1 : i32
    %357 = arith.addi %1, %c1_i32_88 : i32
    %c2_89 = arith.constant 2 : index
    %c1_90 = arith.constant 1 : index
    %358 = arith.index_cast %357 : i32 to index
    %c0_91 = arith.constant 0 : index
    %359 = vector.load %arg4[%c2_89, %c1_90, %358, %c0_91] : memref<6x3x88x128xf32, #tpu.memory_space<vmem>>, vector<1x1x40x128xf32>
    %360 = vector.shape_cast %359 : vector<1x1x40x128xf32> to vector<40x128xf32>
    %c16 = arith.constant 16 : index
    %361 = memref.load %arg2[%c16] : memref<81xf32, #tpu.memory_space<smem>>
    %362 = vector.broadcast %361 : f32 to vector<40x128xf32>
    %363 = arith.mulf %362, %360 : vector<40x128xf32>
    %364 = arith.addf %348, %363 : vector<40x128xf32>
    %c43 = arith.constant 43 : index
    %365 = memref.load %arg2[%c43] : memref<81xf32, #tpu.memory_space<smem>>
    %366 = vector.broadcast %365 : f32 to vector<40x128xf32>
    %367 = arith.mulf %366, %360 : vector<40x128xf32>
    %368 = arith.addf %352, %367 : vector<40x128xf32>
    %c70 = arith.constant 70 : index
    %369 = memref.load %arg2[%c70] : memref<81xf32, #tpu.memory_space<smem>>
    %370 = vector.broadcast %369 : f32 to vector<40x128xf32>
    %371 = arith.mulf %370, %360 : vector<40x128xf32>
    %372 = arith.addf %356, %371 : vector<40x128xf32>
    %c1_i32_92 = arith.constant 1 : i32
    %373 = arith.addi %1, %c1_i32_92 : i32
    %c2_93 = arith.constant 2 : index
    %c2_94 = arith.constant 2 : index
    %374 = arith.index_cast %373 : i32 to index
    %c0_95 = arith.constant 0 : index
    %375 = vector.load %arg4[%c2_93, %c2_94, %374, %c0_95] : memref<6x3x88x128xf32, #tpu.memory_space<vmem>>, vector<1x1x40x128xf32>
    %376 = vector.shape_cast %375 : vector<1x1x40x128xf32> to vector<40x128xf32>
    %c25 = arith.constant 25 : index
    %377 = memref.load %arg2[%c25] : memref<81xf32, #tpu.memory_space<smem>>
    %378 = vector.broadcast %377 : f32 to vector<40x128xf32>
    %379 = arith.mulf %378, %376 : vector<40x128xf32>
    %380 = arith.addf %364, %379 : vector<40x128xf32>
    %c52 = arith.constant 52 : index
    %381 = memref.load %arg2[%c52] : memref<81xf32, #tpu.memory_space<smem>>
    %382 = vector.broadcast %381 : f32 to vector<40x128xf32>
    %383 = arith.mulf %382, %376 : vector<40x128xf32>
    %384 = arith.addf %368, %383 : vector<40x128xf32>
    %c79 = arith.constant 79 : index
    %385 = memref.load %arg2[%c79] : memref<81xf32, #tpu.memory_space<smem>>
    %386 = vector.broadcast %385 : f32 to vector<40x128xf32>
    %387 = arith.mulf %386, %376 : vector<40x128xf32>
    %388 = arith.addf %372, %387 : vector<40x128xf32>
    %c1_i32_96 = arith.constant 1 : i32
    %389 = arith.addi %1, %c1_i32_96 : i32
    %c4_97 = arith.constant 4 : index
    %c0_98 = arith.constant 0 : index
    %390 = arith.index_cast %389 : i32 to index
    %c0_99 = arith.constant 0 : index
    %391 = vector.load %arg4[%c4_97, %c0_98, %390, %c0_99] : memref<6x3x88x128xf32, #tpu.memory_space<vmem>>, vector<1x1x40x128xf32>
    %392 = vector.shape_cast %391 : vector<1x1x40x128xf32> to vector<40x128xf32>
    %c8 = arith.constant 8 : index
    %393 = memref.load %arg2[%c8] : memref<81xf32, #tpu.memory_space<smem>>
    %394 = vector.broadcast %393 : f32 to vector<40x128xf32>
    %395 = arith.mulf %394, %392 : vector<40x128xf32>
    %396 = arith.addf %380, %395 : vector<40x128xf32>
    %c35 = arith.constant 35 : index
    %397 = memref.load %arg2[%c35] : memref<81xf32, #tpu.memory_space<smem>>
    %398 = vector.broadcast %397 : f32 to vector<40x128xf32>
    %399 = arith.mulf %398, %392 : vector<40x128xf32>
    %400 = arith.addf %384, %399 : vector<40x128xf32>
    %c62 = arith.constant 62 : index
    %401 = memref.load %arg2[%c62] : memref<81xf32, #tpu.memory_space<smem>>
    %402 = vector.broadcast %401 : f32 to vector<40x128xf32>
    %403 = arith.mulf %402, %392 : vector<40x128xf32>
    %404 = arith.addf %388, %403 : vector<40x128xf32>
    %c1_i32_100 = arith.constant 1 : i32
    %405 = arith.addi %1, %c1_i32_100 : i32
    %c4_101 = arith.constant 4 : index
    %c1_102 = arith.constant 1 : index
    %406 = arith.index_cast %405 : i32 to index
    %c0_103 = arith.constant 0 : index
    %407 = vector.load %arg4[%c4_101, %c1_102, %406, %c0_103] : memref<6x3x88x128xf32, #tpu.memory_space<vmem>>, vector<1x1x40x128xf32>
    %408 = vector.shape_cast %407 : vector<1x1x40x128xf32> to vector<40x128xf32>
    %c17 = arith.constant 17 : index
    %409 = memref.load %arg2[%c17] : memref<81xf32, #tpu.memory_space<smem>>
    %410 = vector.broadcast %409 : f32 to vector<40x128xf32>
    %411 = arith.mulf %410, %408 : vector<40x128xf32>
    %412 = arith.addf %396, %411 : vector<40x128xf32>
    %c44 = arith.constant 44 : index
    %413 = memref.load %arg2[%c44] : memref<81xf32, #tpu.memory_space<smem>>
    %414 = vector.broadcast %413 : f32 to vector<40x128xf32>
    %415 = arith.mulf %414, %408 : vector<40x128xf32>
    %416 = arith.addf %400, %415 : vector<40x128xf32>
    %c71 = arith.constant 71 : index
    %417 = memref.load %arg2[%c71] : memref<81xf32, #tpu.memory_space<smem>>
    %418 = vector.broadcast %417 : f32 to vector<40x128xf32>
    %419 = arith.mulf %418, %408 : vector<40x128xf32>
    %420 = arith.addf %404, %419 : vector<40x128xf32>
    %c1_i32_104 = arith.constant 1 : i32
    %421 = arith.addi %1, %c1_i32_104 : i32
    %c4_105 = arith.constant 4 : index
    %c2_106 = arith.constant 2 : index
    %422 = arith.index_cast %421 : i32 to index
    %c0_107 = arith.constant 0 : index
    %423 = vector.load %arg4[%c4_105, %c2_106, %422, %c0_107] : memref<6x3x88x128xf32, #tpu.memory_space<vmem>>, vector<1x1x40x128xf32>
    %424 = vector.shape_cast %423 : vector<1x1x40x128xf32> to vector<40x128xf32>
    %c26 = arith.constant 26 : index
    %425 = memref.load %arg2[%c26] : memref<81xf32, #tpu.memory_space<smem>>
    %426 = vector.broadcast %425 : f32 to vector<40x128xf32>
    %427 = arith.mulf %426, %424 : vector<40x128xf32>
    %428 = arith.addf %412, %427 : vector<40x128xf32>
    %c53 = arith.constant 53 : index
    %429 = memref.load %arg2[%c53] : memref<81xf32, #tpu.memory_space<smem>>
    %430 = vector.broadcast %429 : f32 to vector<40x128xf32>
    %431 = arith.mulf %430, %424 : vector<40x128xf32>
    %432 = arith.addf %416, %431 : vector<40x128xf32>
    %c80 = arith.constant 80 : index
    %433 = memref.load %arg2[%c80] : memref<81xf32, #tpu.memory_space<smem>>
    %434 = vector.broadcast %433 : f32 to vector<40x128xf32>
    %435 = arith.mulf %434, %424 : vector<40x128xf32>
    %436 = arith.addf %420, %435 : vector<40x128xf32>
    %c0_108 = arith.constant 0 : index
    %437 = memref.load %arg3[%c0_108] : memref<3xf32, #tpu.memory_space<smem>>
    %438 = vector.broadcast %437 : f32 to vector<40x128xf32>
    %439 = arith.addf %428, %438 : vector<40x128xf32>
    %c0_109 = arith.constant 0 : index
    %c0_110 = arith.constant 0 : index
    %c0_111 = arith.constant 0 : index
    %c0_112 = arith.constant 0 : index
    %440 = vector.load %arg5[%c0_109, %c0_110, %c0_111, %c0_112] : memref<1x3x40x128xf32, #tpu.memory_space<vmem>>, vector<1x1x40x128xf32>
    %441 = vector.shape_cast %440 : vector<1x1x40x128xf32> to vector<40x128xf32>
    %442 = vector.shape_cast %439 : vector<40x128xf32> to vector<1x1x40x128xf32>
    tpu.vector_store %arg5[%c0_109, %c0_110, %c0_111, %c0_112], %442 {strides = array<i32>} : memref<1x3x40x128xf32, #tpu.memory_space<vmem>>, vector<1x1x40x128xf32>,
    %c1_113 = arith.constant 1 : index
    %443 = memref.load %arg3[%c1_113] : memref<3xf32, #tpu.memory_space<smem>>
    %444 = vector.broadcast %443 : f32 to vector<40x128xf32>
    %445 = arith.addf %432, %444 : vector<40x128xf32>
    %c0_114 = arith.constant 0 : index
    %c1_115 = arith.constant 1 : index
    %c0_116 = arith.constant 0 : index
    %c0_117 = arith.constant 0 : index
    %446 = vector.load %arg5[%c0_114, %c1_115, %c0_116, %c0_117] : memref<1x3x40x128xf32, #tpu.memory_space<vmem>>, vector<1x1x40x128xf32>
    %447 = vector.shape_cast %446 : vector<1x1x40x128xf32> to vector<40x128xf32>
    %448 = vector.shape_cast %445 : vector<40x128xf32> to vector<1x1x40x128xf32>
    tpu.vector_store %arg5[%c0_114, %c1_115, %c0_116, %c0_117], %448 {strides = array<i32>} : memref<1x3x40x128xf32, #tpu.memory_space<vmem>>, vector<1x1x40x128xf32>,
    %c2_118 = arith.constant 2 : index
    %449 = memref.load %arg3[%c2_118] : memref<3xf32, #tpu.memory_space<smem>>
    %450 = vector.broadcast %449 : f32 to vector<40x128xf32>
    %451 = arith.addf %436, %450 : vector<40x128xf32>
    %c0_119 = arith.constant 0 : index
    %c2_120 = arith.constant 2 : index
    %c0_121 = arith.constant 0 : index
    %c0_122 = arith.constant 0 : index
    %452 = vector.load %arg5[%c0_119, %c2_120, %c0_121, %c0_122] : memref<1x3x40x128xf32, #tpu.memory_space<vmem>>, vector<1x1x40x128xf32>
    %453 = vector.shape_cast %452 : vector<1x1x40x128xf32> to vector<40x128xf32>
    %454 = vector.shape_cast %451 : vector<40x128xf32> to vector<1x1x40x128xf32>
    tpu.vector_store %arg5[%c0_119, %c2_120, %c0_121, %c0_122], %454 {strides = array<i32>} : memref<1x3x40x128xf32, #tpu.memory_space<vmem>>, vector<1x1x40x128xf32>,
    return
  }
  func.func @transform_0(%arg0: i32, %arg1: i32) -> i32 {
    %c0_i32 = arith.constant 0 : i32
    %c0_i32_0 = arith.constant 0 : i32
    return %c0_i32 : i32
  }
  func.func @transform_1(%arg0: i32, %arg1: i32) -> i32 {
    %c0_i32 = arith.constant 0 : i32
    %c0_i32_0 = arith.constant 0 : i32
    return %c0_i32 : i32
  }
  func.func @transform_2(%arg0: i32, %arg1: i32) -> (i32, i32, i32, i32) {
    %c0_i32 = arith.constant 0 : i32
    %c0_i32_0 = arith.constant 0 : i32
    %c0_i32_1 = arith.constant 0 : i32
    %c0_i32_2 = arith.constant 0 : i32
    return %arg0, %c0_i32, %c0_i32_0, %c0_i32_1 : i32, i32, i32, i32
  }
  func.func @transform_3(%arg0: i32, %arg1: i32) -> (i32, i32, i32, i32) {
    %c0_i32 = arith.constant 0 : i32
    %c0_i32_0 = arith.constant 0 : i32
    %c0_i32_1 = arith.constant 0 : i32
    return %arg0, %c0_i32, %arg1, %c0_i32_0 : i32, i32, i32, i32
  }
}

</mosaic_0001>

<bundles_post_ra>
// kernel: conv2d_pallas.1
= control target key start
LH: loop header
LB: loop body
LE: loop exit
PB: predicated region body
PF: predicated region fallthrough
CT: control target
= control target key end

     0   :  { %8 = vsyncpa [#allocation3], 0  ;;  %s2583_s0 = inlined_call_operand.vmem [shape: f32[81], index: 0, kind: input, shape index: {}]   ;;  %s2584_s1 = inlined_call_operand.vmem [shape: f32[3], index: 1, kind: input, shape index: {}]   ;;  %s2585_s2 = inlined_call_operand.vmem [shape: f32[6,3,88,128], index: 2, kind: input, shape index: {}]   ;;  %s2586_s3 = inlined_call_operand.vmem [shape: f32[1,3,80,128], index: 3, kind: output, shape index: {}]  }
   0x1   :  { %9 = vsyncpa [#allocation5], 0  ;;  %s2076_s12 = smov 0   ;;  %s2078_s13 = smov 0  }
   0x2   :  { %s2080_s14 = smov 0   ;;  %s2082_s15 = smov 0  }
   0x3   :  { %s2084_s16 = smov 0  }
   0x4 LB: > { %s1679_s17 = sadd.s32 4294967295, %s2052_s16   ;;  %s24_s18 = sadd.s32 1, %s2048_s15  ;;  %s2052_s16 = sphi %s2084_s16, %s15_s16   ;;  %s2048_s15 = sphi %s2082_s15, %s2592_s15   ;;  %s2044_s14 = sphi %s2080_s14, %s2591_s14   ;;  %s2040_s13 = sphi %s2078_s13, %s2590_s13   ;;  %s2036_s12 = sphi %s2076_s12, %s2589_s12  }
   0x5   : > { %p25_p0 = scmp.ge.s32.totalorder %s24_s18, 2  ;;  %s104_s19 = sadd.s32 1, %s2040_s13 }
   0x6   : > { %p114_p1 = scmp.ne.s32.totalorder %s2040_s13, %s2036_s12  ;;  %p115_p2 = scmp.eq.s32.totalorder %s1679_s17, 1 }
   0x7   : > { %s2594_s18 = smov (%p25_p0, %s24_s18), 0  ;;  %p1681_p4 = scmp.ge.s32.totalorder %s2052_s16, 1 }
   0x8   : > { %p2108_p3 = por %p115_p2, %p114_p1  ;;  %s100_s21 = ssub.s32 %s2048_s15, %s2594_s18 }
   0x9   : > { %p128_p5 = scmp.lt.s32.totalorder %s2052_s16, 3  ;;  %p102_p6 = scmp.eq.s32.totalorder %s100_s21, 0 }
   0xa   : > { %p2116_p8 = scmp.eq.s32.totalorder %s1679_s17, 0  ;;  %s140_s26 = sshll.u32 %s2583_s0, 4  ;;  %s141_s26 = int_to_ptr.vmem [resolvable:$true] %s140_s26 }
   0xb   : > { %p129_p7 = pnand %p1681_p4, %p128_p5  ;;  %s150_s29 = sshll.u32 %s2584_s1, 4  ;;  %s151_s29 = int_to_ptr.vmem [resolvable:$true] %s150_s29 }
   0xc   : > { %s2121_s23 = scalar_select %p102_p6, %s2040_s13, %s104_s19  }
   0xd   : > { %p1923_p9 = pneg %p129_p7  ;;  %s2054_s30 = smov [#allocation2]  }
   0xe   : > { %s2055_s4 = smov [#allocation4]   ;;  %173 = sbr.rel (%p129_p7) target bundleno = 278 (0x116), region = 32 }
   0xf   : > { %p1924_p10 = pnand %p2116_p8, %p1923_p9 }
  0x11   : > { %1926 = dma.vmem_to_smem (!%p1924_p10), %s141_s26, 16, %s2054_s30, [#allocation3]  }
  0x12   : > { %1929 = dma.vmem_to_smem (!%p1924_p10), %s151_s29, 16, %s2055_s4, [#allocation5]  }
  0x13   : > { %2027 = dma.done.wait (%p2116_p8), [#allocation3], 16  }
  0x14   : > { %2029 = vsyncadd (%p2116_p8), [#allocation3], 4294967280 }
  0x15   : > { %2031 = dma.done.wait (%p2116_p8), [#allocation5], 16  }
  0x16   : > { %2033 = vsyncadd (%p2116_p8), [#allocation5], 4294967280 }
  0x17   : > { %185 = sfence }
  0x18   : > { %s212_s5 = smul.u32 40, %s2044_s14  ;;  %s219_s6 = sld [smem:[#allocation2]] }
  0x19   : > { %s1688_s7 = sld [smem:[#allocation2 + $0x1b]] }
  0x1a   : > { %s1689_s8 = sld [smem:[#allocation2 + $0x36]]  ;;  %s2145_s17 = scalar_lea.vmem %s2585_s2, %s212_s5 }
  0x1b   : > { %s1695_s9 = sld [smem:[#allocation2 + $0x9]]  ;;  %v214_v0 = vld [vmem:[%s2145_s17] sm:$0xff]  ;;  %v215_v1 = vld [vmem:[%s2145_s17 + $0x8] sm:$0xff]  ;;  %v216_v2 = vld [vmem:[%s2145_s17 + $0x10] sm:$0xff] }
  0x1c   : > { %s1696_s19 = sld [smem:[#allocation2 + $0x24]]  ;;  %v217_v4 = vld [vmem:[%s2145_s17 + $0x18] sm:$0xff]  ;;  %v218_v5 = vld [vmem:[%s2145_s17 + $0x20] sm:$0xff]  ;;  %v1692_v12 = vld [vmem:[%s2145_s17 + $0x68] sm:$0xff] }
  0x1d   : > { %s2152_s21 = sld [smem:[#allocation2 + $0x3f]]  ;;  %v1690_v10 = vld [vmem:[%s2145_s17 + $0x58] sm:$0xff]  ;;  %v1691_v11 = vld [vmem:[%s2145_s17 + $0x60] sm:$0xff]  ;;  %v1693_v16 = vld [vmem:[%s2145_s17 + $0x70] sm:$0xff] }
  0x1e   : > { %v220_v3 = vstv %s219_s6  ;;  %s2157_s22 = sld [smem:[#allocation2 + $0x12]]  ;;  %v1694_v17 = vld [vmem:[%s2145_s17 + $0x78] sm:$0xff]  ;;  %v1698_v46 = vld [vmem:[%s2145_s17 + $0xb0] sm:$0xff]  ;;  %v1700_v48 = vld [vmem:[%s2145_s17 + $0xc0] sm:$0xff] }
  0x1f   : > { %v232_v6 = vstv %s1688_s7  ;;  %v221_v7 = vmul.f32 %v220_v3, %v214_v0  ;;  %v222_v8 = vmul.f32 %v220_v3, %v215_v1  ;;  %v223_v9 = vmul.f32 %v220_v3, %v216_v2  ;;  %s2161_s24 = sld [smem:[#allocation2 + $0x2d]]  ;;  %v1699_v47 = vld [vmem:[%s2145_s17 + $0xb8] sm:$0xff]  ;;  %v1701_v54 = vld [vmem:[%s2145_s17 + $0xc8] sm:$0xff]  ;;  %v1702_v55 = vld [vmem:[%s2145_s17 + $0xd0] sm:$0xff] }
  0x20   : > { %v224_v13 = vmul.f32 %v220_v3, %v217_v4  ;;  %v225_v14 = vmul.f32 %v220_v3, %v218_v5  ;;  %v244_v15 = vstv %s1689_s8  ;;  %v233_v19 = vmul.f32 %v232_v6, %v214_v0  ;;  %s2164_s25 = sld [smem:[#allocation2 + $0x48]] }
  0x21   : > { %v263_v18 = vstv %s1695_s9  ;;  %v234_v20 = vmul.f32 %v232_v6, %v215_v1  ;;  %v235_v21 = vmul.f32 %v232_v6, %v216_v2  ;;  %v236_v22 = vmul.f32 %v232_v6, %v217_v4  ;;  %s2170_s26 = sld [smem:[#allocation2 + $0x1]] }
  0x22   : > { %v264_v23 = vmul.f32 %v1690_v10, %v263_v18  ;;  %v265_v24 = vmul.f32 %v1691_v11, %v263_v18  ;;  %v266_v25 = vmul.f32 %v1692_v12, %v263_v18  ;;  %v275_v26 = vstv %s1696_s19  ;;  %s2174_s27 = sld [smem:[#allocation2 + $0x1c]] }
  0x23   : > { %v237_v27 = vmul.f32 %v232_v6, %v218_v5  ;;  %v245_v28 = vmul.f32 %v244_v15, %v214_v0  ;;  %v267_v29 = vmul.f32 %v1693_v16, %v263_v18  ;;  %v268_v30 = vmul.f32 %v1694_v17, %v263_v18  ;;  %s2178_s28 = sld [smem:[#allocation2 + $0x37]] }
  0x24   : > { %v246_v31 = vmul.f32 %v244_v15, %v215_v1  ;;  %v247_v32 = vmul.f32 %v244_v15, %v216_v2  ;;  %v248_v33 = vmul.f32 %v244_v15, %v217_v4  ;;  %v249_v34 = vmul.f32 %v244_v15, %v218_v5  ;;  %s2186_s29 = sld [smem:[#allocation2 + $0xa]] }
  0x25   : > { %v276_v35 = vmul.f32 %v1690_v10, %v275_v26  ;;  %v277_v36 = vmul.f32 %v1691_v11, %v275_v26  ;;  %v278_v37 = vmul.f32 %v1692_v12, %v275_v26  ;;  %v287_v38 = vstv %s2152_s21  ;;  %s2189_s30 = sld [smem:[#allocation2 + $0x25]] }
  0x26   : > { %v269_v39 = vadd.f32 %v264_v23, %v221_v7  ;;  %v270_v40 = vadd.f32 %v265_v24, %v222_v8  ;;  %v271_v41 = vadd.f32 %v266_v25, %v223_v9  ;;  %v279_v42 = vmul.f32 %v1693_v16, %v275_v26  ;;  %s2192_s4 = sld [smem:[#allocation2 + $0x40]] }
  0x27   : > { %v272_v43 = vadd.f32 %v267_v29, %v224_v13  ;;  %v273_v44 = vadd.f32 %v268_v30, %v225_v14  ;;  %v280_v45 = vmul.f32 %v1694_v17, %v275_v26  ;;  %v306_v49 = vstv %s2157_s22  ;;  %v1708_v26 = vld [vmem:[%s2145_s17 + $0x220] sm:$0xff]  ;;  %s2199_s6 = sld [smem:[#allocation2 + $0x13]] }
  0x28   : > { %v288_v50 = vmul.f32 %v1690_v10, %v287_v38  ;;  %v289_v51 = vmul.f32 %v1691_v11, %v287_v38  ;;  %v290_v52 = vmul.f32 %v1692_v12, %v287_v38  ;;  %v291_v53 = vmul.f32 %v1693_v16, %v287_v38  ;;  %s2203_s7 = sld [smem:[#allocation2 + $0x2e]] }
  0x29   : > { %v281_v56 = vadd.f32 %v276_v35, %v233_v19  ;;  %v282_v57 = vadd.f32 %v277_v36, %v234_v20  ;;  %v283_v58 = vadd.f32 %v278_v37, %v235_v21  ;;  %v292_v59 = vmul.f32 %v1694_v17, %v287_v38  ;;  %v1706_v19 = vld [vmem:[%s2145_s17 + $0x210] sm:$0xff]  ;;  %v1707_v20 = vld [vmem:[%s2145_s17 + $0x218] sm:$0xff]  ;;  %s2206_s8 = sld [smem:[#allocation2 + $0x49]] }
  0x2a   : > { %v284_v60 = vadd.f32 %v279_v42, %v236_v22  ;;  %v307_v61 = vmul.f32 %v1698_v46, %v306_v49  ;;  %v308_v62 = vmul.f32 %v1699_v47, %v306_v49  ;;  %v309_v63 = vmul.f32 %v1700_v48, %v306_v49  ;;  %s2212_s9 = sld [smem:[#allocation2 + $0x2]] }
  0x2b   : > { %v285_v0 = vadd.f32 %v280_v45, %v237_v27  ;;  %v310_v1 = vmul.f32 %v1701_v54, %v306_v49  ;;  %v311_v2 = vmul.f32 %v1702_v55, %v306_v49  ;;  %v318_v3 = vstv %s2161_s24  ;;  %v1709_v27 = vld [vmem:[%s2145_s17 + $0x228] sm:$0xff]  ;;  %s2217_s10 = sld [smem:[#allocation2 + $0x1d]] }
  0x2c   : > { %v293_v4 = vadd.f32 %v288_v50, %v245_v28  ;;  %v294_v5 = vadd.f32 %v289_v51, %v246_v31  ;;  %v295_v6 = vadd.f32 %v290_v52, %v247_v32  ;;  %v296_v7 = vadd.f32 %v291_v53, %v248_v33  ;;  %v1710_v28 = vld [vmem:[%s2145_s17 + $0x230] sm:$0xff]  ;;  %s2220_s11 = sld [smem:[#allocation2 + $0x38]] }
  0x2d   : > { %v297_v8 = vadd.f32 %v292_v59, %v249_v34  ;;  %v319_v9 = vmul.f32 %v1698_v46, %v318_v3  ;;  %v320_v10 = vmul.f32 %v1699_v47, %v318_v3  ;;  %v330_v11 = vstv %s2164_s25  ;;  %s2225_s19 = sld [smem:[#allocation2 + $0xb]] }
  0x2e   : > { %v312_v12 = vadd.f32 %v307_v61, %v269_v39  ;;  %v313_v13 = vadd.f32 %v308_v62, %v270_v40  ;;  %v314_v14 = vadd.f32 %v309_v63, %v271_v41  ;;  %v321_v15 = vmul.f32 %v1700_v48, %v318_v3  ;;  %v1715_v61 = vld [vmem:[%s2145_s17 + $0x270] sm:$0xff]  ;;  %v1716_v62 = vld [vmem:[%s2145_s17 + $0x278] sm:$0xff]  ;;  %v1717_v63 = vld [vmem:[%s2145_s17 + $0x280] sm:$0xff]  ;;  %s2231_s21 = sld [smem:[#allocation2 + $0x26]] }
  0x2f   : > { %v315_v16 = vadd.f32 %v310_v1, %v272_v43  ;;  %v316_v17 = vadd.f32 %v311_v2, %v273_v44  ;;  %v322_v18 = vmul.f32 %v1701_v54, %v318_v3  ;;  %v349_v21 = vstv %s2170_s26  ;;  %s2234_s22 = sld [smem:[#allocation2 + $0x41]] }
  0x30   : > { %v323_v22 = vmul.f32 %v1702_v55, %v318_v3  ;;  %v331_v23 = vmul.f32 %v1698_v46, %v330_v11  ;;  %v332_v24 = vmul.f32 %v1699_v47, %v330_v11  ;;  %v333_v25 = vmul.f32 %v1700_v48, %v330_v11  ;;  %s2239_s24 = sld [smem:[#allocation2 + $0x14]] }
  0x31   : > { %v324_v29 = vadd.f32 %v319_v9, %v281_v56  ;;  %v325_v30 = vadd.f32 %v320_v10, %v282_v57  ;;  %v334_v31 = vmul.f32 %v1701_v54, %v330_v11  ;;  %v335_v32 = vmul.f32 %v1702_v55, %v330_v11  ;;  %v1714_v57 = vld [vmem:[%s2145_s17 + $0x268] sm:$0xff]  ;;  %s2244_s25 = sld [smem:[#allocation2 + $0x2f]] }
  0x32   : > { %v326_v33 = vadd.f32 %v321_v15, %v283_v58  ;;  %v350_v34 = vmul.f32 %v1706_v19, %v349_v21  ;;  %v351_v35 = vmul.f32 %v1707_v20, %v349_v21  ;;  %v361_v36 = vstv %s2174_s27  ;;  %s2248_s26 = sld [smem:[#allocation2 + $0x4a]] }
  0x33   : > { %v327_v37 = vadd.f32 %v322_v18, %v284_v60  ;;  %v352_v38 = vmul.f32 %v1708_v26, %v349_v21  ;;  %v353_v39 = vmul.f32 %v1709_v27, %v349_v21  ;;  %v354_v40 = vmul.f32 %v1710_v28, %v349_v21  ;;  %s2256_s27 = sld [smem:[#allocation2 + $0x3]] }
  0x34   : > { %v328_v41 = vadd.f32 %v323_v22, %v285_v0  ;;  %v336_v42 = vadd.f32 %v331_v23, %v293_v4  ;;  %v337_v43 = vadd.f32 %v332_v24, %v294_v5  ;;  %v338_v44 = vadd.f32 %v333_v25, %v295_v6  ;;  %v1718_v5 = vld [vmem:[%s2145_s17 + $0x288] sm:$0xff] }
  0x35   : > { %v339_v45 = vadd.f32 %v334_v31, %v296_v7  ;;  %v340_v46 = vadd.f32 %v335_v32, %v297_v8  ;;  %v362_v47 = vmul.f32 %v1706_v19, %v361_v36  ;;  %v373_v48 = vstv %s2178_s28  ;;  %s2259_s28 = sld [smem:[#allocation2 + $0x1e]] }
  0x36   : > { %v355_v49 = vadd.f32 %v350_v34, %v312_v12  ;;  %v356_v50 = vadd.f32 %v351_v35, %v313_v13  ;;  %v363_v51 = vmul.f32 %v1707_v20, %v361_v36  ;;  %v364_v52 = vmul.f32 %v1708_v26, %v361_v36  ;;  %v1723_v34 = vld [vmem:[%s2145_s17 + $0x2c8] sm:$0xff]  ;;  %v1724_v35 = vld [vmem:[%s2145_s17 + $0x2d0] sm:$0xff] }
  0x37   : > { %v357_v53 = vadd.f32 %v352_v38, %v314_v14  ;;  %v358_v54 = vadd.f32 %v353_v39, %v315_v16  ;;  %v359_v55 = vadd.f32 %v354_v40, %v316_v17  ;;  %v365_v56 = vmul.f32 %v1709_v27, %v361_v36 }
  0x38   : > { %v366_v58 = vmul.f32 %v1710_v28, %v361_v36  ;;  %v374_v59 = vmul.f32 %v1706_v19, %v373_v48  ;;  %v375_v60 = vmul.f32 %v1707_v20, %v373_v48  ;;  %v392_v0 = vstv %s2186_s29  ;;  %s2262_s29 = sld [smem:[#allocation2 + $0x39]] }
  0x39   : > { %v367_v1 = vadd.f32 %v362_v47, %v324_v29  ;;  %v376_v2 = vmul.f32 %v1708_v26, %v373_v48  ;;  %v377_v3 = vmul.f32 %v1709_v27, %v373_v48  ;;  %v378_v4 = vmul.f32 %v1710_v28, %v373_v48 }
  0x3a   : > { %v368_v6 = vadd.f32 %v363_v51, %v325_v30  ;;  %v369_v7 = vadd.f32 %v364_v52, %v326_v33  ;;  %v393_v8 = vmul.f32 %v1714_v57, %v392_v0  ;;  %v404_v9 = vstv %s2189_s30  ;;  %v1722_v33 = vld [vmem:[%s2145_s17 + $0x2c0] sm:$0xff]  ;;  %s2270_s30 = sld [smem:[#allocation2 + $0xc]] }
  0x3b   : > { %v370_v10 = vadd.f32 %v365_v56, %v327_v37  ;;  %v394_v11 = vmul.f32 %v1715_v61, %v392_v0  ;;  %v395_v12 = vmul.f32 %v1716_v62, %v392_v0  ;;  %v396_v13 = vmul.f32 %v1717_v63, %v392_v0 }
  0x3c   : > { %v371_v14 = vadd.f32 %v366_v58, %v328_v41  ;;  %v379_v15 = vadd.f32 %v374_v59, %v336_v42  ;;  %v380_v16 = vadd.f32 %v375_v60, %v337_v43  ;;  %v397_v17 = vmul.f32 %v1718_v5, %v392_v0  ;;  %v1725_v41 = vld [vmem:[%s2145_s17 + $0x2d8] sm:$0xff]  ;;  %v1726_v42 = vld [vmem:[%s2145_s17 + $0x2e0] sm:$0xff] }
  0x3d   : > { %v381_v18 = vadd.f32 %v376_v2, %v338_v44  ;;  %v382_v19 = vadd.f32 %v377_v3, %v339_v45  ;;  %v383_v20 = vadd.f32 %v378_v4, %v340_v46  ;;  %v405_v21 = vmul.f32 %v1714_v57, %v404_v9 }
  0x3e   : > { %v398_v22 = vadd.f32 %v393_v8, %v355_v49  ;;  %v406_v23 = vmul.f32 %v1715_v61, %v404_v9  ;;  %v407_v24 = vmul.f32 %v1716_v62, %v404_v9  ;;  %v416_v25 = vstv %s2192_s4  ;;  %s2273_s4 = sld [smem:[#allocation2 + $0x27]] }
  0x3f   : > { %v399_v26 = vadd.f32 %v394_v11, %v356_v50  ;;  %v400_v27 = vadd.f32 %v395_v12, %v357_v53  ;;  %v401_v28 = vadd.f32 %v396_v13, %v358_v54  ;;  %v408_v29 = vmul.f32 %v1717_v63, %v404_v9  ;;  %v1732_v13 = vld [vmem:[%s2145_s17 + $0x430] sm:$0xff] }
  0x40   : > { %v402_v30 = vadd.f32 %v397_v17, %v359_v55  ;;  %v409_v31 = vmul.f32 %v1718_v5, %v404_v9  ;;  %v417_v32 = vmul.f32 %v1714_v57, %v416_v25  ;;  %v435_v36 = vstv %s2199_s6  ;;  %s2275_s6 = sld [smem:[#allocation2 + $0x42]] }
  0x41   : > { %v410_v37 = vadd.f32 %v405_v21, %v367_v1  ;;  %v418_v38 = vmul.f32 %v1715_v61, %v416_v25  ;;  %v419_v39 = vmul.f32 %v1716_v62, %v416_v25  ;;  %v420_v40 = vmul.f32 %v1717_v63, %v416_v25 }
  0x42   : > { %v411_v43 = vadd.f32 %v406_v23, %v368_v6  ;;  %v412_v44 = vadd.f32 %v407_v24, %v369_v7  ;;  %v421_v45 = vmul.f32 %v1718_v5, %v416_v25  ;;  %v447_v46 = vstv %s2203_s7  ;;  %v1730_v6 = vld [vmem:[%s2145_s17 + $0x420] sm:$0xff]  ;;  %v1731_v7 = vld [vmem:[%s2145_s17 + $0x428] sm:$0xff]  ;;  %s2281_s7 = sld [smem:[#allocation2 + $0x15]] }
  0x43   : > { %v413_v47 = vadd.f32 %v408_v29, %v370_v10  ;;  %v436_v48 = vmul.f32 %v1722_v33, %v435_v36  ;;  %v437_v49 = vmul.f32 %v1723_v34, %v435_v36  ;;  %v438_v50 = vmul.f32 %v1724_v35, %v435_v36 }
  0x44   : > { %v414_v51 = vadd.f32 %v409_v31, %v371_v14  ;;  %v422_v52 = vadd.f32 %v417_v32, %v379_v15  ;;  %v439_v53 = vmul.f32 %v1725_v41, %v435_v36  ;;  %v440_v54 = vmul.f32 %v1726_v42, %v435_v36  ;;  %v1733_v14 = vld [vmem:[%s2145_s17 + $0x438] sm:$0xff]  ;;  %v1734_v15 = vld [vmem:[%s2145_s17 + $0x440] sm:$0xff] }
  0x45   : > { %v423_v55 = vadd.f32 %v418_v38, %v380_v16  ;;  %v424_v56 = vadd.f32 %v419_v39, %v381_v18  ;;  %v425_v57 = vadd.f32 %v420_v40, %v382_v19  ;;  %v448_v58 = vmul.f32 %v1722_v33, %v447_v46 }
  0x46   : > { %v426_v59 = vadd.f32 %v421_v45, %v383_v20  ;;  %v449_v60 = vmul.f32 %v1723_v34, %v447_v46  ;;  %v450_v61 = vmul.f32 %v1724_v35, %v447_v46  ;;  %v459_v62 = vstv %s2206_s8  ;;  %s2287_s8 = sld [smem:[#allocation2 + $0x30]] }
  0x47   : > { %v441_v63 = vadd.f32 %v436_v48, %v398_v22  ;;  %v442_v0 = vadd.f32 %v437_v49, %v399_v26  ;;  %v443_v1 = vadd.f32 %v438_v50, %v400_v27  ;;  %v451_v2 = vmul.f32 %v1725_v41, %v447_v46  ;;  %v1740_v50 = vld [vmem:[%s2145_s17 + $0x488] sm:$0xff] }
  0x48   : > { %v444_v3 = vadd.f32 %v439_v53, %v401_v28  ;;  %v445_v4 = vadd.f32 %v440_v54, %v402_v30  ;;  %v452_v5 = vmul.f32 %v1726_v42, %v447_v46  ;;  %v478_v8 = vstv %s2212_s9  ;;  %s2290_s9 = sld [smem:[#allocation2 + $0x4b]] }
  0x49   : > { %v453_v9 = vadd.f32 %v448_v58, %v410_v37  ;;  %v460_v10 = vmul.f32 %v1722_v33, %v459_v62  ;;  %v461_v11 = vmul.f32 %v1723_v34, %v459_v62  ;;  %v462_v12 = vmul.f32 %v1724_v35, %v459_v62 }
  0x4a   : > { %v454_v16 = vadd.f32 %v449_v60, %v411_v43  ;;  %v455_v17 = vadd.f32 %v450_v61, %v412_v44  ;;  %v463_v18 = vmul.f32 %v1725_v41, %v459_v62  ;;  %v464_v19 = vmul.f32 %v1726_v42, %v459_v62  ;;  %v1738_v43 = vld [vmem:[%s2145_s17 + $0x478] sm:$0xff]  ;;  %v1739_v44 = vld [vmem:[%s2145_s17 + $0x480] sm:$0xff] }
  0x4b   : > { %v456_v20 = vadd.f32 %v451_v2, %v413_v47  ;;  %v479_v21 = vmul.f32 %v1730_v6, %v478_v8  ;;  %v480_v22 = vmul.f32 %v1731_v7, %v478_v8  ;;  %v490_v23 = vstv %s2217_s10  ;;  %s2298_s10 = sld [smem:[#allocation2 + $0x4]] }
  0x4c   : > { %v457_v24 = vadd.f32 %v452_v5, %v414_v51  ;;  %v481_v25 = vmul.f32 %v1732_v13, %v478_v8  ;;  %v482_v26 = vmul.f32 %v1733_v14, %v478_v8  ;;  %v483_v27 = vmul.f32 %v1734_v15, %v478_v8  ;;  %v1741_v51 = vld [vmem:[%s2145_s17 + $0x490] sm:$0xff] }
  0x4d   : > { %v465_v28 = vadd.f32 %v460_v10, %v422_v52  ;;  %v466_v29 = vadd.f32 %v461_v11, %v423_v55  ;;  %v467_v30 = vadd.f32 %v462_v12, %v424_v56  ;;  %v491_v31 = vmul.f32 %v1730_v6, %v490_v23  ;;  %v1742_v52 = vld [vmem:[%s2145_s17 + $0x498] sm:$0xff] }
  0x4e   : > { %v468_v32 = vadd.f32 %v463_v18, %v425_v57  ;;  %v469_v33 = vadd.f32 %v464_v19, %v426_v59  ;;  %v492_v34 = vmul.f32 %v1731_v7, %v490_v23  ;;  %v502_v35 = vstv %s2220_s11  ;;  %s2301_s11 = sld [smem:[#allocation2 + $0x1f]] }
  0x4f   : > { %v484_v36 = vadd.f32 %v479_v21, %v441_v63  ;;  %v485_v37 = vadd.f32 %v480_v22, %v442_v0  ;;  %v493_v38 = vmul.f32 %v1732_v13, %v490_v23  ;;  %v494_v39 = vmul.f32 %v1733_v14, %v490_v23 }
  0x50   : > { %v486_v40 = vadd.f32 %v481_v25, %v443_v1  ;;  %v487_v41 = vadd.f32 %v482_v26, %v444_v3  ;;  %v488_v42 = vadd.f32 %v483_v27, %v445_v4  ;;  %v521_v45 = vstv %s2225_s19  ;;  %v1750_v25 = vld [vmem:[%s2145_s17 + $0x4f0] sm:$0xff]  ;;  %s2304_s19 = sld [smem:[#allocation2 + $0x3a]] }
  0x51   : > { %v495_v46 = vmul.f32 %v1734_v15, %v490_v23  ;;  %v496_v47 = vadd.f32 %v491_v31, %v453_v9  ;;  %v503_v48 = vmul.f32 %v1730_v6, %v502_v35  ;;  %v504_v49 = vmul.f32 %v1731_v7, %v502_v35  ;;  %v1748_v23 = vld [vmem:[%s2145_s17 + $0x4e0] sm:$0xff] }
  0x52   : > { %v497_v53 = vadd.f32 %v492_v34, %v454_v16  ;;  %v505_v54 = vmul.f32 %v1732_v13, %v502_v35  ;;  %v506_v55 = vmul.f32 %v1733_v14, %v502_v35  ;;  %v507_v56 = vmul.f32 %v1734_v15, %v502_v35  ;;  %v1746_v16 = vld [vmem:[%s2145_s17 + $0x4d0] sm:$0xff] }
  0x53   : > { %v498_v57 = vadd.f32 %v493_v38, %v455_v17  ;;  %v499_v58 = vadd.f32 %v494_v39, %v456_v20  ;;  %v522_v59 = vmul.f32 %v1738_v43, %v521_v45  ;;  %v523_v60 = vmul.f32 %v1739_v44, %v521_v45  ;;  %v1747_v17 = vld [vmem:[%s2145_s17 + $0x4d8] sm:$0xff] }
  0x54   : > { %v524_v61 = vmul.f32 %v1740_v50, %v521_v45  ;;  %v525_v62 = vmul.f32 %v1741_v51, %v521_v45  ;;  %v526_v63 = vmul.f32 %v1742_v52, %v521_v45  ;;  %v533_v0 = vstv %s2231_s21  ;;  %s2311_s21 = sld [smem:[#allocation2 + $0xd]] }
  0x55   : > { %v500_v1 = vadd.f32 %v495_v46, %v457_v24  ;;  %v508_v2 = vadd.f32 %v503_v48, %v465_v28  ;;  %v509_v3 = vadd.f32 %v504_v49, %v466_v29  ;;  %v534_v4 = vmul.f32 %v1738_v43, %v533_v0  ;;  %v1749_v24 = vld [vmem:[%s2145_s17 + $0x4e8] sm:$0xff] }
  0x56   : > { %v510_v5 = vadd.f32 %v505_v54, %v467_v30  ;;  %v511_v6 = vadd.f32 %v506_v55, %v468_v32  ;;  %v512_v7 = vadd.f32 %v507_v56, %v469_v33  ;;  %v545_v8 = vstv %s2234_s22  ;;  %v1754_v54 = vld [vmem:[%s2145_s17 + $0x108] sm:$0xff]  ;;  %s2315_s22 = sld [smem:[#allocation2 + $0x28]] }
  0x57   : > { %v527_v9 = vadd.f32 %v522_v59, %v484_v36  ;;  %v528_v10 = vadd.f32 %v523_v60, %v485_v37  ;;  %v535_v11 = vmul.f32 %v1739_v44, %v533_v0  ;;  %v536_v12 = vmul.f32 %v1740_v50, %v533_v0  ;;  %v1756_v59 = vld [vmem:[%s2145_s17 + $0x118] sm:$0xff]  ;;  %v1757_v60 = vld [vmem:[%s2145_s17 + $0x120] sm:$0xff] }
  0x58   : > { %v529_v13 = vadd.f32 %v524_v61, %v486_v40  ;;  %v530_v14 = vadd.f32 %v525_v62, %v487_v41  ;;  %v531_v15 = vadd.f32 %v526_v63, %v488_v42  ;;  %v564_v18 = vstv %s2239_s24  ;;  %s2318_s24 = sld [smem:[#allocation2 + $0x43]] }
  0x59   : > { %v537_v19 = vmul.f32 %v1741_v51, %v533_v0  ;;  %v538_v20 = vmul.f32 %v1742_v52, %v533_v0  ;;  %v539_v21 = vadd.f32 %v534_v4, %v496_v47  ;;  %v546_v22 = vmul.f32 %v1738_v43, %v545_v8 }
  0x5a   : > { %v547_v26 = vmul.f32 %v1739_v44, %v545_v8  ;;  %v548_v27 = vmul.f32 %v1740_v50, %v545_v8  ;;  %v549_v28 = vmul.f32 %v1741_v51, %v545_v8  ;;  %v550_v29 = vmul.f32 %v1742_v52, %v545_v8 }
  0x5b   : > { %v540_v30 = vadd.f32 %v535_v11, %v497_v53  ;;  %v541_v31 = vadd.f32 %v536_v12, %v498_v57  ;;  %v565_v32 = vmul.f32 %v1746_v16, %v564_v18  ;;  %v576_v33 = vstv %s2244_s25  ;;  %s2324_s25 = sld [smem:[#allocation2 + $0x16]] }
  0x5c   : > { %v566_v34 = vmul.f32 %v1747_v17, %v564_v18  ;;  %v567_v35 = vmul.f32 %v1748_v23, %v564_v18  ;;  %v568_v36 = vmul.f32 %v1749_v24, %v564_v18  ;;  %v569_v37 = vmul.f32 %v1750_v25, %v564_v18 }
  0x5d   : > { %v542_v38 = vadd.f32 %v537_v19, %v499_v58  ;;  %v543_v39 = vadd.f32 %v538_v20, %v500_v1  ;;  %v551_v40 = vadd.f32 %v546_v22, %v508_v2  ;;  %v577_v41 = vmul.f32 %v1746_v16, %v576_v33  ;;  %v1755_v58 = vld [vmem:[%s2145_s17 + $0x110] sm:$0xff]  ;;  %v1758_v2 = vld [vmem:[%s2145_s17 + $0x128] sm:$0xff] }
  0x5e   : > { %v552_v42 = vadd.f32 %v547_v26, %v509_v3  ;;  %v553_v43 = vadd.f32 %v548_v27, %v510_v5  ;;  %v554_v44 = vadd.f32 %v549_v28, %v511_v6  ;;  %v555_v45 = vadd.f32 %v550_v29, %v512_v7 }
  0x5f   : > { %v570_v46 = vadd.f32 %v565_v32, %v527_v9  ;;  %v578_v47 = vmul.f32 %v1747_v17, %v576_v33  ;;  %v579_v48 = vmul.f32 %v1748_v23, %v576_v33  ;;  %v588_v49 = vstv %s2248_s26  ;;  %v1763_v32 = vld [vmem:[%s2145_s17 + $0x168] sm:$0xff]  ;;  %s2329_s26 = sld [smem:[#allocation2 + $0x31]] }
  0x60   : > { %v571_v50 = vadd.f32 %v566_v34, %v528_v10  ;;  %v572_v51 = vadd.f32 %v567_v35, %v529_v13  ;;  %v573_v52 = vadd.f32 %v568_v36, %v530_v14  ;;  %v574_v53 = vadd.f32 %v569_v37, %v531_v15  ;;  %v1765_v37 = vld [vmem:[%s2145_s17 + $0x178] sm:$0xff] }
  0x61   : > { %v580_v55 = vmul.f32 %v1749_v24, %v576_v33  ;;  %v581_v56 = vmul.f32 %v1750_v25, %v576_v33  ;;  %v582_v57 = vadd.f32 %v577_v41, %v539_v21  ;;  %v607_v61 = vstv %s2256_s27  ;;  %v1764_v33 = vld [vmem:[%s2145_s17 + $0x170] sm:$0xff]  ;;  %s2332_s27 = sld [smem:[#allocation2 + $0x4c]] }
  0x62   : > { %v589_v62 = vmul.f32 %v1746_v16, %v588_v49  ;;  %v590_v63 = vmul.f32 %v1747_v17, %v588_v49  ;;  %v591_v0 = vmul.f32 %v1748_v23, %v588_v49  ;;  %v592_v1 = vmul.f32 %v1749_v24, %v588_v49 }
  0x63   : > { %v583_v3 = vadd.f32 %v578_v47, %v540_v30  ;;  %v584_v4 = vadd.f32 %v579_v48, %v541_v31  ;;  %v593_v5 = vmul.f32 %v1750_v25, %v588_v49  ;;  %v608_v6 = vmul.f32 %v1754_v54, %v607_v61  ;;  %v1762_v31 = vld [vmem:[%s2145_s17 + $0x160] sm:$0xff] }
  0x64   : > { %v609_v7 = vmul.f32 %v1755_v58, %v607_v61  ;;  %v610_v8 = vmul.f32 %v1756_v59, %v607_v61  ;;  %v611_v9 = vmul.f32 %v1757_v60, %v607_v61  ;;  %v619_v10 = vstv %s2259_s28  ;;  %s2337_s28 = sld [smem:[#allocation2 + $0x5]] }
  0x65   : > { %v585_v11 = vadd.f32 %v580_v55, %v542_v38  ;;  %v586_v12 = vadd.f32 %v581_v56, %v543_v39  ;;  %v612_v13 = vmul.f32 %v1758_v2, %v607_v61  ;;  %v620_v14 = vmul.f32 %v1754_v54, %v619_v10  ;;  %v1766_v38 = vld [vmem:[%s2145_s17 + $0x180] sm:$0xff] }
  0x66   : > { %v594_v15 = vadd.f32 %v589_v62, %v551_v40  ;;  %v595_v16 = vadd.f32 %v590_v63, %v552_v42  ;;  %v596_v17 = vadd.f32 %v591_v0, %v553_v43  ;;  %v597_v18 = vadd.f32 %v592_v1, %v554_v44 }
  0x67   : > { %v598_v19 = vadd.f32 %v593_v5, %v555_v45  ;;  %v621_v20 = vmul.f32 %v1755_v58, %v619_v10  ;;  %v622_v21 = vmul.f32 %v1756_v59, %v619_v10  ;;  %v631_v22 = vstv %s2262_s29  ;;  %s2343_s29 = sld [smem:[#allocation2 + $0x20]] }
  0x68   : > { %v613_v23 = vadd.f32 %v608_v6, %v570_v46  ;;  %v614_v24 = vadd.f32 %v609_v7, %v571_v50  ;;  %v615_v25 = vadd.f32 %v610_v8, %v572_v51  ;;  %v616_v26 = vadd.f32 %v611_v9, %v573_v52 }
  0x69   : > { %v617_v27 = vadd.f32 %v612_v13, %v574_v53  ;;  %v623_v28 = vmul.f32 %v1757_v60, %v619_v10  ;;  %v624_v29 = vmul.f32 %v1758_v2, %v619_v10  ;;  %v625_v30 = vadd.f32 %v620_v14, %v582_v57  ;;  %v1772_v10 = vld [vmem:[%s2145_s17 + $0x1c8] sm:$0xff] }
  0x6a   : > { %v632_v34 = vmul.f32 %v1754_v54, %v631_v22  ;;  %v633_v35 = vmul.f32 %v1755_v58, %v631_v22  ;;  %v634_v36 = vmul.f32 %v1756_v59, %v631_v22  ;;  %v650_v39 = vstv %s2270_s30  ;;  %s2346_s30 = sld [smem:[#allocation2 + $0x3b]] }
  0x6b   : > { %v626_v40 = vadd.f32 %v621_v20, %v583_v3  ;;  %v627_v41 = vadd.f32 %v622_v21, %v584_v4  ;;  %v635_v42 = vmul.f32 %v1757_v60, %v631_v22  ;;  %v636_v43 = vmul.f32 %v1758_v2, %v631_v22  ;;  %v1770_v3 = vld [vmem:[%s2145_s17 + $0x1b8] sm:$0xff]  ;;  %v1771_v4 = vld [vmem:[%s2145_s17 + $0x1c0] sm:$0xff] }
  0x6c   : > { %v651_v44 = vmul.f32 %v1762_v31, %v650_v39  ;;  %v652_v45 = vmul.f32 %v1763_v32, %v650_v39  ;;  %v653_v46 = vmul.f32 %v1764_v33, %v650_v39  ;;  %v662_v47 = vstv %s2273_s4  ;;  %s2351_s4 = sld [smem:[#allocation2 + $0xe]] }
  0x6d   : > { %v628_v48 = vadd.f32 %v623_v28, %v585_v11  ;;  %v629_v49 = vadd.f32 %v624_v29, %v586_v12  ;;  %v654_v50 = vmul.f32 %v1765_v37, %v650_v39  ;;  %v655_v51 = vmul.f32 %v1766_v38, %v650_v39  ;;  %v1773_v11 = vld [vmem:[%s2145_s17 + $0x1d0] sm:$0xff]  ;;  %v1774_v12 = vld [vmem:[%s2145_s17 + $0x1d8] sm:$0xff] }
  0x6e   : > { %v637_v52 = vadd.f32 %v632_v34, %v594_v15  ;;  %v638_v53 = vadd.f32 %v633_v35, %v595_v16  ;;  %v639_v54 = vadd.f32 %v634_v36, %v596_v17  ;;  %v674_v55 = vstv %s2275_s6  ;;  %s2356_s6 = sld [smem:[#allocation2 + $0x29]] }
  0x6f   : > { %v640_v56 = vadd.f32 %v635_v42, %v597_v18  ;;  %v641_v57 = vadd.f32 %v636_v43, %v598_v19  ;;  %v663_v58 = vmul.f32 %v1762_v31, %v662_v47  ;;  %v664_v59 = vmul.f32 %v1763_v32, %v662_v47 }
  0x70   : > { %v656_v60 = vadd.f32 %v651_v44, %v613_v23  ;;  %v657_v61 = vadd.f32 %v652_v45, %v614_v24  ;;  %v658_v62 = vadd.f32 %v653_v46, %v615_v25  ;;  %v665_v63 = vmul.f32 %v1764_v33, %v662_v47  ;;  %v1779_v45 = vld [vmem:[%s2145_s17 + $0x320] sm:$0xff]  ;;  %v1780_v46 = vld [vmem:[%s2145_s17 + $0x328] sm:$0xff] }
  0x71   : > { %v659_v0 = vadd.f32 %v654_v50, %v616_v26  ;;  %v660_v1 = vadd.f32 %v655_v51, %v617_v27  ;;  %v666_v2 = vmul.f32 %v1765_v37, %v662_v47  ;;  %v693_v5 = vstv %s2281_s7  ;;  %s2360_s7 = sld [smem:[#allocation2 + $0x44]] }
  0x72   : > { %v667_v6 = vmul.f32 %v1766_v38, %v662_v47  ;;  %v675_v7 = vmul.f32 %v1762_v31, %v674_v55  ;;  %v676_v8 = vmul.f32 %v1763_v32, %v674_v55  ;;  %v677_v9 = vmul.f32 %v1764_v33, %v674_v55  ;;  %v1781_v47 = vld [vmem:[%s2145_s17 + $0x330] sm:$0xff] }
  0x73   : > { %v668_v13 = vadd.f32 %v663_v58, %v625_v30  ;;  %v669_v14 = vadd.f32 %v664_v59, %v626_v40  ;;  %v678_v15 = vmul.f32 %v1765_v37, %v674_v55  ;;  %v679_v16 = vmul.f32 %v1766_v38, %v674_v55 }
  0x74   : > { %v670_v17 = vadd.f32 %v665_v63, %v627_v41  ;;  %v694_v18 = vmul.f32 %v1770_v3, %v693_v5  ;;  %v695_v19 = vmul.f32 %v1771_v4, %v693_v5  ;;  %v705_v20 = vstv %s2287_s8  ;;  %v1778_v41 = vld [vmem:[%s2145_s17 + $0x318] sm:$0xff]  ;;  %s2368_s8 = sld [smem:[#allocation2 + $0x17]] }
  0x75   : > { %v671_v21 = vadd.f32 %v666_v2, %v628_v48  ;;  %v696_v22 = vmul.f32 %v1772_v10, %v693_v5  ;;  %v697_v23 = vmul.f32 %v1773_v11, %v693_v5  ;;  %v698_v24 = vmul.f32 %v1774_v12, %v693_v5 }
  0x76   : > { %v672_v25 = vadd.f32 %v667_v6, %v629_v49  ;;  %v680_v26 = vadd.f32 %v675_v7, %v637_v52  ;;  %v681_v27 = vadd.f32 %v676_v8, %v638_v53  ;;  %v682_v28 = vadd.f32 %v677_v9, %v639_v54  ;;  %v1782_v53 = vld [vmem:[%s2145_s17 + $0x338] sm:$0xff] }
  0x77   : > { %v683_v29 = vadd.f32 %v678_v15, %v640_v56  ;;  %v684_v30 = vadd.f32 %v679_v16, %v641_v57  ;;  %v706_v31 = vmul.f32 %v1770_v3, %v705_v20  ;;  %v717_v32 = vstv %s2290_s9  ;;  %s2371_s9 = sld [smem:[#allocation2 + $0x32]] }
  0x78   : > { %v699_v33 = vadd.f32 %v694_v18, %v656_v60  ;;  %v700_v34 = vadd.f32 %v695_v19, %v657_v61  ;;  %v707_v35 = vmul.f32 %v1771_v4, %v705_v20  ;;  %v708_v36 = vmul.f32 %v1772_v10, %v705_v20  ;;  %v1787_v18 = vld [vmem:[%s2145_s17 + $0x378] sm:$0xff]  ;;  %v1788_v19 = vld [vmem:[%s2145_s17 + $0x380] sm:$0xff] }
  0x79   : > { %v701_v37 = vadd.f32 %v696_v22, %v658_v62  ;;  %v702_v38 = vadd.f32 %v697_v23, %v659_v0  ;;  %v703_v39 = vadd.f32 %v698_v24, %v660_v1  ;;  %v709_v40 = vmul.f32 %v1773_v11, %v705_v20 }
  0x7a   : > { %v710_v42 = vmul.f32 %v1774_v12, %v705_v20  ;;  %v718_v43 = vmul.f32 %v1770_v3, %v717_v32  ;;  %v719_v44 = vmul.f32 %v1771_v4, %v717_v32  ;;  %v736_v48 = vstv %s2298_s10  ;;  %s2374_s10 = sld [smem:[#allocation2 + $0x4d]] }
  0x7b   : > { %v711_v49 = vadd.f32 %v706_v31, %v668_v13  ;;  %v720_v50 = vmul.f32 %v1772_v10, %v717_v32  ;;  %v721_v51 = vmul.f32 %v1773_v11, %v717_v32  ;;  %v722_v52 = vmul.f32 %v1774_v12, %v717_v32 }
  0x7c   : > { %v712_v54 = vadd.f32 %v707_v35, %v669_v14  ;;  %v713_v55 = vadd.f32 %v708_v36, %v670_v17  ;;  %v737_v56 = vmul.f32 %v1778_v41, %v736_v48  ;;  %v748_v57 = vstv %s2301_s11  ;;  %v1786_v17 = vld [vmem:[%s2145_s17 + $0x370] sm:$0xff]  ;;  %s2382_s11 = sld [smem:[#allocation2 + $0x6]] }
  0x7d   : > { %v714_v58 = vadd.f32 %v709_v40, %v671_v21  ;;  %v738_v59 = vmul.f32 %v1779_v45, %v736_v48  ;;  %v739_v60 = vmul.f32 %v1780_v46, %v736_v48  ;;  %v740_v61 = vmul.f32 %v1781_v47, %v736_v48 }
  0x7e   : > { %v715_v62 = vadd.f32 %v710_v42, %v672_v25  ;;  %v723_v63 = vadd.f32 %v718_v43, %v680_v26  ;;  %v724_v0 = vadd.f32 %v719_v44, %v681_v27  ;;  %v741_v1 = vmul.f32 %v1782_v53, %v736_v48  ;;  %v1789_v25 = vld [vmem:[%s2145_s17 + $0x388] sm:$0xff]  ;;  %v1790_v26 = vld [vmem:[%s2145_s17 + $0x390] sm:$0xff] }
  0x7f   : > { %v725_v2 = vadd.f32 %v720_v50, %v682_v28  ;;  %v726_v3 = vadd.f32 %v721_v51, %v683_v29  ;;  %v727_v4 = vadd.f32 %v722_v52, %v684_v30  ;;  %v749_v5 = vmul.f32 %v1778_v41, %v748_v57 }
  0x80   : > { %v742_v6 = vadd.f32 %v737_v56, %v699_v33  ;;  %v750_v7 = vmul.f32 %v1779_v45, %v748_v57  ;;  %v751_v8 = vmul.f32 %v1780_v46, %v748_v57  ;;  %v760_v9 = vstv %s2304_s19  ;;  %s2385_s19 = sld [smem:[#allocation2 + $0x21]] }
  0x81   : > { %v743_v10 = vadd.f32 %v738_v59, %v700_v34  ;;  %v744_v11 = vadd.f32 %v739_v60, %v701_v37  ;;  %v745_v12 = vadd.f32 %v740_v61, %v702_v38  ;;  %v752_v13 = vmul.f32 %v1781_v47, %v748_v57  ;;  %v1796_v61 = vld [vmem:[%s2145_s17 + $0x3d8] sm:$0xff] }
  0x82   : > { %v746_v14 = vadd.f32 %v741_v1, %v703_v39  ;;  %v753_v15 = vmul.f32 %v1782_v53, %v748_v57  ;;  %v761_v16 = vmul.f32 %v1778_v41, %v760_v9  ;;  %v779_v20 = vstv %s2311_s21  ;;  %s2387_s21 = sld [smem:[#allocation2 + $0x3c]] }
  0x83   : > { %v754_v21 = vadd.f32 %v749_v5, %v711_v49  ;;  %v762_v22 = vmul.f32 %v1779_v45, %v760_v9  ;;  %v763_v23 = vmul.f32 %v1780_v46, %v760_v9  ;;  %v764_v24 = vmul.f32 %v1781_v47, %v760_v9 }
  0x84   : > { %v755_v27 = vadd.f32 %v750_v7, %v712_v54  ;;  %v756_v28 = vadd.f32 %v751_v8, %v713_v55  ;;  %v765_v29 = vmul.f32 %v1782_v53, %v760_v9  ;;  %v791_v30 = vstv %s2315_s22  ;;  %v1794_v54 = vld [vmem:[%s2145_s17 + $0x3c8] sm:$0xff]  ;;  %v1795_v55 = vld [vmem:[%s2145_s17 + $0x3d0] sm:$0xff]  ;;  %s2393_s22 = sld [smem:[#allocation2 + $0xf]] }
  0x85   : > { %v757_v31 = vadd.f32 %v752_v13, %v714_v58  ;;  %v780_v32 = vmul.f32 %v1786_v17, %v779_v20  ;;  %v781_v33 = vmul.f32 %v1787_v18, %v779_v20  ;;  %v782_v34 = vmul.f32 %v1788_v19, %v779_v20 }
  0x86   : > { %v758_v35 = vadd.f32 %v753_v15, %v715_v62  ;;  %v766_v36 = vadd.f32 %v761_v16, %v723_v63  ;;  %v783_v37 = vmul.f32 %v1789_v25, %v779_v20  ;;  %v784_v38 = vmul.f32 %v1790_v26, %v779_v20  ;;  %v1797_v62 = vld [vmem:[%s2145_s17 + $0x3e0] sm:$0xff]  ;;  %v1798_v63 = vld [vmem:[%s2145_s17 + $0x3e8] sm:$0xff] }
  0x87   : > { %v767_v39 = vadd.f32 %v762_v22, %v724_v0  ;;  %v768_v40 = vadd.f32 %v763_v23, %v725_v2  ;;  %v769_v41 = vadd.f32 %v764_v24, %v726_v3  ;;  %v792_v42 = vmul.f32 %v1786_v17, %v791_v30 }
  0x88   : > { %v770_v43 = vadd.f32 %v765_v29, %v727_v4  ;;  %v793_v44 = vmul.f32 %v1787_v18, %v791_v30  ;;  %v794_v45 = vmul.f32 %v1788_v19, %v791_v30  ;;  %v803_v46 = vstv %s2318_s24  ;;  %s2399_s24 = sld [smem:[#allocation2 + $0x2a]] }
  0x89   : > { %v785_v47 = vadd.f32 %v780_v32, %v742_v6  ;;  %v786_v48 = vadd.f32 %v781_v33, %v743_v10  ;;  %v787_v49 = vadd.f32 %v782_v34, %v744_v11  ;;  %v795_v50 = vmul.f32 %v1789_v25, %v791_v30  ;;  %v1804_v34 = vld [vmem:[%s2145_s17 + $0x538] sm:$0xff] }
  0x8a   : > { %v788_v51 = vadd.f32 %v783_v37, %v745_v12  ;;  %v789_v52 = vadd.f32 %v784_v38, %v746_v14  ;;  %v796_v53 = vmul.f32 %v1790_v26, %v791_v30  ;;  %v822_v56 = vstv %s2324_s25  ;;  %s2402_s25 = sld [smem:[#allocation2 + $0x45]] }
  0x8b   : > { %v797_v57 = vadd.f32 %v792_v42, %v754_v21  ;;  %v804_v58 = vmul.f32 %v1786_v17, %v803_v46  ;;  %v805_v59 = vmul.f32 %v1787_v18, %v803_v46  ;;  %v806_v60 = vmul.f32 %v1788_v19, %v803_v46 }
  0x8c   : > { %v798_v0 = vadd.f32 %v793_v44, %v755_v27  ;;  %v799_v1 = vadd.f32 %v794_v45, %v756_v28  ;;  %v807_v2 = vmul.f32 %v1789_v25, %v803_v46  ;;  %v808_v3 = vmul.f32 %v1790_v26, %v803_v46  ;;  %v1802_v27 = vld [vmem:[%s2145_s17 + $0x528] sm:$0xff]  ;;  %v1803_v28 = vld [vmem:[%s2145_s17 + $0x530] sm:$0xff] }
  0x8d   : > { %v800_v4 = vadd.f32 %v795_v50, %v757_v31  ;;  %v823_v5 = vmul.f32 %v1794_v54, %v822_v56  ;;  %v824_v6 = vmul.f32 %v1795_v55, %v822_v56  ;;  %v834_v7 = vstv %s2329_s26  ;;  %s2410_s26 = sld [smem:[#allocation2 + $0x18]] }
  0x8e   : > { %v801_v8 = vadd.f32 %v796_v53, %v758_v35  ;;  %v825_v9 = vmul.f32 %v1796_v61, %v822_v56  ;;  %v826_v10 = vmul.f32 %v1797_v62, %v822_v56  ;;  %v827_v11 = vmul.f32 %v1798_v63, %v822_v56  ;;  %v1805_v35 = vld [vmem:[%s2145_s17 + $0x540] sm:$0xff] }
  0x8f   : > { %v809_v12 = vadd.f32 %v804_v58, %v766_v36  ;;  %v810_v13 = vadd.f32 %v805_v59, %v767_v39  ;;  %v811_v14 = vadd.f32 %v806_v60, %v768_v40  ;;  %v835_v15 = vmul.f32 %v1794_v54, %v834_v7  ;;  %v1806_v36 = vld [vmem:[%s2145_s17 + $0x548] sm:$0xff] }
  0x90   : > { %v812_v16 = vadd.f32 %v807_v2, %v769_v41  ;;  %v813_v17 = vadd.f32 %v808_v3, %v770_v43  ;;  %v836_v18 = vmul.f32 %v1795_v55, %v834_v7  ;;  %v846_v19 = vstv %s2332_s27  ;;  %s2413_s27 = sld [smem:[#allocation2 + $0x33]] }
  0x91   : > { %v828_v20 = vadd.f32 %v823_v5, %v785_v47  ;;  %v829_v21 = vadd.f32 %v824_v6, %v786_v48  ;;  %v837_v22 = vmul.f32 %v1796_v61, %v834_v7  ;;  %v838_v23 = vmul.f32 %v1797_v62, %v834_v7 }
  0x92   : > { %v830_v24 = vadd.f32 %v825_v9, %v787_v49  ;;  %v831_v25 = vadd.f32 %v826_v10, %v788_v51  ;;  %v832_v26 = vadd.f32 %v827_v11, %v789_v52  ;;  %v865_v29 = vstv %s2337_s28  ;;  %v1814_v9 = vld [vmem:[%s2145_s17 + $0x5a0] sm:$0xff]  ;;  %s2416_s28 = sld [smem:[#allocation2 + $0x4e]] }
  0x93   : > { %v839_v30 = vmul.f32 %v1798_v63, %v834_v7  ;;  %v840_v31 = vadd.f32 %v835_v15, %v797_v57  ;;  %v847_v32 = vmul.f32 %v1794_v54, %v846_v19  ;;  %v848_v33 = vmul.f32 %v1795_v55, %v846_v19  ;;  %v1812_v7 = vld [vmem:[%s2145_s17 + $0x590] sm:$0xff] }
  0x94   : > { %v841_v37 = vadd.f32 %v836_v18, %v798_v0  ;;  %v849_v38 = vmul.f32 %v1796_v61, %v846_v19  ;;  %v850_v39 = vmul.f32 %v1797_v62, %v846_v19  ;;  %v851_v40 = vmul.f32 %v1798_v63, %v846_v19  ;;  %v1810_v0 = vld [vmem:[%s2145_s17 + $0x580] sm:$0xff] }
  0x95   : > { %v842_v41 = vadd.f32 %v837_v22, %v799_v1  ;;  %v843_v42 = vadd.f32 %v838_v23, %v800_v4  ;;  %v866_v43 = vmul.f32 %v1802_v27, %v865_v29  ;;  %v867_v44 = vmul.f32 %v1803_v28, %v865_v29  ;;  %v1811_v1 = vld [vmem:[%s2145_s17 + $0x588] sm:$0xff] }
  0x96   : > { %v868_v45 = vmul.f32 %v1804_v34, %v865_v29  ;;  %v869_v46 = vmul.f32 %v1805_v35, %v865_v29  ;;  %v870_v47 = vmul.f32 %v1806_v36, %v865_v29  ;;  %v877_v48 = vstv %s2343_s29  ;;  %s2423_s29 = sld [smem:[#allocation2 + $0x7]] }
  0x97   : > { %v844_v49 = vadd.f32 %v839_v30, %v801_v8  ;;  %v852_v50 = vadd.f32 %v847_v32, %v809_v12  ;;  %v853_v51 = vadd.f32 %v848_v33, %v810_v13  ;;  %v878_v52 = vmul.f32 %v1802_v27, %v877_v48  ;;  %v1813_v8 = vld [vmem:[%s2145_s17 + $0x598] sm:$0xff] }
  0x98   : > { %v854_v53 = vadd.f32 %v849_v38, %v811_v14  ;;  %v855_v54 = vadd.f32 %v850_v39, %v812_v16  ;;  %v856_v55 = vadd.f32 %v851_v40, %v813_v17  ;;  %v889_v56 = vstv %s2346_s30  ;;  %v1818_v38 = vld [vmem:[%s2145_s17 + $0x5d8] sm:$0xff]  ;;  %s2427_s30 = sld [smem:[#allocation2 + $0x22]] }
  0x99   : > { %v871_v57 = vadd.f32 %v866_v43, %v828_v20  ;;  %v872_v58 = vadd.f32 %v867_v44, %v829_v21  ;;  %v879_v59 = vmul.f32 %v1803_v28, %v877_v48  ;;  %v880_v60 = vmul.f32 %v1804_v34, %v877_v48  ;;  %v1820_v43 = vld [vmem:[%s2145_s17 + $0x5e8] sm:$0xff]  ;;  %v1821_v44 = vld [vmem:[%s2145_s17 + $0x5f0] sm:$0xff] }
  0x9a   : > { %v873_v61 = vadd.f32 %v868_v45, %v830_v24  ;;  %v874_v62 = vadd.f32 %v869_v46, %v831_v25  ;;  %v875_v63 = vadd.f32 %v870_v47, %v832_v26  ;;  %v908_v2 = vstv %s2351_s4  ;;  %s2430_s4 = sld [smem:[#allocation2 + $0x3d]] }
  0x9b   : > { %v881_v3 = vmul.f32 %v1805_v35, %v877_v48  ;;  %v882_v4 = vmul.f32 %v1806_v36, %v877_v48  ;;  %v883_v5 = vadd.f32 %v878_v52, %v840_v31  ;;  %v890_v6 = vmul.f32 %v1802_v27, %v889_v56 }
  0x9c   : > { %v891_v10 = vmul.f32 %v1803_v28, %v889_v56  ;;  %v892_v11 = vmul.f32 %v1804_v34, %v889_v56  ;;  %v893_v12 = vmul.f32 %v1805_v35, %v889_v56  ;;  %v894_v13 = vmul.f32 %v1806_v36, %v889_v56 }
  0x9d   : > { %v884_v14 = vadd.f32 %v879_v59, %v841_v37  ;;  %v885_v15 = vadd.f32 %v880_v60, %v842_v41  ;;  %v909_v16 = vmul.f32 %v1810_v0, %v908_v2  ;;  %v920_v17 = vstv %s2356_s6  ;;  %s2436_s6 = sld [smem:[#allocation2 + $0x10]] }
  0x9e   : > { %v910_v18 = vmul.f32 %v1811_v1, %v908_v2  ;;  %v911_v19 = vmul.f32 %v1812_v7, %v908_v2  ;;  %v912_v20 = vmul.f32 %v1813_v8, %v908_v2  ;;  %v913_v21 = vmul.f32 %v1814_v9, %v908_v2 }
  0x9f   : > { %v886_v22 = vadd.f32 %v881_v3, %v843_v42  ;;  %v887_v23 = vadd.f32 %v882_v4, %v844_v49  ;;  %v895_v24 = vadd.f32 %v890_v6, %v852_v50  ;;  %v921_v25 = vmul.f32 %v1810_v0, %v920_v17  ;;  %v1819_v42 = vld [vmem:[%s2145_s17 + $0x5e0] sm:$0xff]  ;;  %v1822_v50 = vld [vmem:[%s2145_s17 + $0x5f8] sm:$0xff] }
  0xa0   : > { %v896_v26 = vadd.f32 %v891_v10, %v853_v51  ;;  %v897_v27 = vadd.f32 %v892_v11, %v854_v53  ;;  %v898_v28 = vadd.f32 %v893_v12, %v855_v54  ;;  %v899_v29 = vadd.f32 %v894_v13, %v856_v55 }
  0xa1   : > { %v914_v30 = vadd.f32 %v909_v16, %v871_v57  ;;  %v922_v31 = vmul.f32 %v1811_v1, %v920_v17  ;;  %v923_v32 = vmul.f32 %v1812_v7, %v920_v17  ;;  %v932_v33 = vstv %s2360_s7  ;;  %v1827_v16 = vld [vmem:[%s2145_s17 + $0x9] sm:$0xff]  ;;  %s2441_s7 = sld [smem:[#allocation2 + $0x2b]] }
  0xa2   : > { %v915_v34 = vadd.f32 %v910_v18, %v872_v58  ;;  %v916_v35 = vadd.f32 %v911_v19, %v873_v61  ;;  %v917_v36 = vadd.f32 %v912_v20, %v874_v62  ;;  %v918_v37 = vadd.f32 %v913_v21, %v875_v63  ;;  %v1829_v21 = vld [vmem:[%s2145_s17 + $0x19] sm:$0xff] }
  0xa3   : > { %v924_v39 = vmul.f32 %v1813_v8, %v920_v17  ;;  %v925_v40 = vmul.f32 %v1814_v9, %v920_v17  ;;  %v926_v41 = vadd.f32 %v921_v25, %v883_v5  ;;  %v951_v45 = vstv %s2368_s8  ;;  %v1828_v17 = vld [vmem:[%s2145_s17 + $0x11] sm:$0xff]  ;;  %s2444_s8 = sld [smem:[#allocation2 + $0x46]] }
  0xa4   : > { %v933_v46 = vmul.f32 %v1810_v0, %v932_v33  ;;  %v934_v47 = vmul.f32 %v1811_v1, %v932_v33  ;;  %v935_v48 = vmul.f32 %v1812_v7, %v932_v33  ;;  %v936_v49 = vmul.f32 %v1813_v8, %v932_v33 }
  0xa5   : > { %v927_v51 = vadd.f32 %v922_v31, %v884_v14  ;;  %v928_v52 = vadd.f32 %v923_v32, %v885_v15  ;;  %v937_v53 = vmul.f32 %v1814_v9, %v932_v33  ;;  %v952_v54 = vmul.f32 %v1818_v38, %v951_v45  ;;  %v1826_v15 = vld [vmem:[%s2145_s17 + $0x1] sm:$0xff] }
  0xa6   : > { %v953_v55 = vmul.f32 %v1819_v42, %v951_v45  ;;  %v954_v56 = vmul.f32 %v1820_v43, %v951_v45  ;;  %v955_v57 = vmul.f32 %v1821_v44, %v951_v45  ;;  %v963_v58 = vstv %s2371_s9  ;;  %s2449_s9 = sld [smem:[#allocation2 + $0x19]] }
  0xa7   : > { %v929_v59 = vadd.f32 %v924_v39, %v886_v22  ;;  %v930_v60 = vadd.f32 %v925_v40, %v887_v23  ;;  %v956_v61 = vmul.f32 %v1822_v50, %v951_v45  ;;  %v964_v62 = vmul.f32 %v1818_v38, %v963_v58  ;;  %v1830_v22 = vld [vmem:[%s2145_s17 + $0x21] sm:$0xff] }
  0xa8   : > { %v938_v63 = vadd.f32 %v933_v46, %v895_v24  ;;  %v939_v0 = vadd.f32 %v934_v47, %v896_v26  ;;  %v940_v1 = vadd.f32 %v935_v48, %v897_v27  ;;  %v941_v2 = vadd.f32 %v936_v49, %v898_v28 }
  0xa9   : > { %v942_v3 = vadd.f32 %v937_v53, %v899_v29  ;;  %v965_v4 = vmul.f32 %v1819_v42, %v963_v58  ;;  %v966_v5 = vmul.f32 %v1820_v43, %v963_v58  ;;  %v975_v6 = vstv %s2374_s10  ;;  %s2455_s10 = sld [smem:[#allocation2 + $0x34]] }
  0xaa   : > { %v957_v7 = vadd.f32 %v952_v54, %v914_v30  ;;  %v958_v8 = vadd.f32 %v953_v55, %v915_v34  ;;  %v959_v9 = vadd.f32 %v954_v56, %v916_v35  ;;  %v960_v10 = vadd.f32 %v955_v57, %v917_v36 }
  0xab   : > { %v961_v11 = vadd.f32 %v956_v61, %v918_v37  ;;  %v967_v12 = vmul.f32 %v1821_v44, %v963_v58  ;;  %v968_v13 = vmul.f32 %v1822_v50, %v963_v58  ;;  %v969_v14 = vadd.f32 %v964_v62, %v926_v41  ;;  %v1836_v58 = vld [vmem:[%s2145_s17 + $0x69] sm:$0xff] }
  0xac   : > { %v976_v18 = vmul.f32 %v1818_v38, %v975_v6  ;;  %v977_v19 = vmul.f32 %v1819_v42, %v975_v6  ;;  %v978_v20 = vmul.f32 %v1820_v43, %v975_v6  ;;  %v994_v23 = vstv %s2382_s11  ;;  %s2458_s11 = sld [smem:[#allocation2 + $0x4f]] }
  0xad   : > { %v970_v24 = vadd.f32 %v965_v4, %v927_v51  ;;  %v971_v25 = vadd.f32 %v966_v5, %v928_v52  ;;  %v979_v26 = vmul.f32 %v1821_v44, %v975_v6  ;;  %v980_v27 = vmul.f32 %v1822_v50, %v975_v6  ;;  %v1834_v51 = vld [vmem:[%s2145_s17 + $0x59] sm:$0xff]  ;;  %v1835_v52 = vld [vmem:[%s2145_s17 + $0x61] sm:$0xff] }
  0xae   : > { %v995_v28 = vmul.f32 %v1826_v15, %v994_v23  ;;  %v996_v29 = vmul.f32 %v1827_v16, %v994_v23  ;;  %v997_v30 = vmul.f32 %v1828_v17, %v994_v23  ;;  %v1006_v31 = vstv %s2385_s19  ;;  %s2463_s19 = sld [smem:[#allocation2 + $0x8]] }
  0xaf   : > { %v972_v32 = vadd.f32 %v967_v12, %v929_v59  ;;  %v973_v33 = vadd.f32 %v968_v13, %v930_v60  ;;  %v998_v34 = vmul.f32 %v1829_v21, %v994_v23  ;;  %v999_v35 = vmul.f32 %v1830_v22, %v994_v23  ;;  %v1837_v59 = vld [vmem:[%s2145_s17 + $0x71] sm:$0xff]  ;;  %v1838_v60 = vld [vmem:[%s2145_s17 + $0x79] sm:$0xff] }
  0xb0   : > { %v981_v36 = vadd.f32 %v976_v18, %v938_v63  ;;  %v982_v37 = vadd.f32 %v977_v19, %v939_v0  ;;  %v983_v38 = vadd.f32 %v978_v20, %v940_v1  ;;  %v1018_v39 = vstv %s2387_s21  ;;  %s2468_s21 = sld [smem:[#allocation2 + $0x23]] }
  0xb1   : > { %v984_v40 = vadd.f32 %v979_v26, %v941_v2  ;;  %v985_v41 = vadd.f32 %v980_v27, %v942_v3  ;;  %v1007_v42 = vmul.f32 %v1826_v15, %v1006_v31  ;;  %v1008_v43 = vmul.f32 %v1827_v16, %v1006_v31 }
  0xb2   : > { %v1000_v44 = vadd.f32 %v995_v28, %v957_v7  ;;  %v1001_v45 = vadd.f32 %v996_v29, %v958_v8  ;;  %v1002_v46 = vadd.f32 %v997_v30, %v959_v9  ;;  %v1009_v47 = vmul.f32 %v1828_v17, %v1006_v31  ;;  %v1843_v29 = vld [vmem:[%s2145_s17 + $0xb9] sm:$0xff]  ;;  %v1844_v30 = vld [vmem:[%s2145_s17 + $0xc1] sm:$0xff] }
  0xb3   : > { %v1003_v48 = vadd.f32 %v998_v34, %v960_v10  ;;  %v1004_v49 = vadd.f32 %v999_v35, %v961_v11  ;;  %v1010_v50 = vmul.f32 %v1829_v21, %v1006_v31  ;;  %v1037_v53 = vstv %s2393_s22  ;;  %s2472_s22 = sld [smem:[#allocation2 + $0x3e]] }
  0xb4   : > { %v1011_v54 = vmul.f32 %v1830_v22, %v1006_v31  ;;  %v1019_v55 = vmul.f32 %v1826_v15, %v1018_v39  ;;  %v1020_v56 = vmul.f32 %v1827_v16, %v1018_v39  ;;  %v1021_v57 = vmul.f32 %v1828_v17, %v1018_v39  ;;  %v1845_v31 = vld [vmem:[%s2145_s17 + $0xc9] sm:$0xff] }
  0xb5   : > { %v1012_v61 = vadd.f32 %v1007_v42, %v969_v14  ;;  %v1013_v62 = vadd.f32 %v1008_v43, %v970_v24  ;;  %v1022_v63 = vmul.f32 %v1829_v21, %v1018_v39  ;;  %v1023_v0 = vmul.f32 %v1830_v22, %v1018_v39 }
  0xb6   : > { %v1014_v1 = vadd.f32 %v1009_v47, %v971_v25  ;;  %v1038_v2 = vmul.f32 %v1834_v51, %v1037_v53  ;;  %v1039_v3 = vmul.f32 %v1835_v52, %v1037_v53  ;;  %v1049_v4 = vstv %s2399_s24  ;;  %v1842_v25 = vld [vmem:[%s2145_s17 + $0xb1] sm:$0xff]  ;;  %s2480_s24 = sld [smem:[#allocation2 + $0x11]] }
  0xb7   : > { %v1015_v5 = vadd.f32 %v1010_v50, %v972_v32  ;;  %v1040_v6 = vmul.f32 %v1836_v58, %v1037_v53  ;;  %v1041_v7 = vmul.f32 %v1837_v59, %v1037_v53  ;;  %v1042_v8 = vmul.f32 %v1838_v60, %v1037_v53 }
  0xb8   : > { %v1016_v9 = vadd.f32 %v1011_v54, %v973_v33  ;;  %v1024_v10 = vadd.f32 %v1019_v55, %v981_v36  ;;  %v1025_v11 = vadd.f32 %v1020_v56, %v982_v37  ;;  %v1026_v12 = vadd.f32 %v1021_v57, %v983_v38  ;;  %v1846_v37 = vld [vmem:[%s2145_s17 + $0xd1] sm:$0xff] }
  0xb9   : > { %v1027_v13 = vadd.f32 %v1022_v63, %v984_v40  ;;  %v1028_v14 = vadd.f32 %v1023_v0, %v985_v41  ;;  %v1050_v15 = vmul.f32 %v1834_v51, %v1049_v4  ;;  %v1061_v16 = vstv %s2402_s25  ;;  %s2483_s25 = sld [smem:[#allocation2 + $0x2c]] }
  0xba   : > { %v1043_v17 = vadd.f32 %v1038_v2, %v1000_v44  ;;  %v1044_v18 = vadd.f32 %v1039_v3, %v1001_v45  ;;  %v1051_v19 = vmul.f32 %v1835_v52, %v1049_v4  ;;  %v1052_v20 = vmul.f32 %v1836_v58, %v1049_v4  ;;  %v1851_v2 = vld [vmem:[%s2145_s17 + $0x219] sm:$0xff]  ;;  %v1852_v3 = vld [vmem:[%s2145_s17 + $0x221] sm:$0xff] }
  0xbb   : > { %v1045_v21 = vadd.f32 %v1040_v6, %v1002_v46  ;;  %v1046_v22 = vadd.f32 %v1041_v7, %v1003_v48  ;;  %v1047_v23 = vadd.f32 %v1042_v8, %v1004_v49  ;;  %v1053_v24 = vmul.f32 %v1837_v59, %v1049_v4 }
  0xbc   : > { %v1054_v26 = vmul.f32 %v1838_v60, %v1049_v4  ;;  %v1062_v27 = vmul.f32 %v1834_v51, %v1061_v16  ;;  %v1063_v28 = vmul.f32 %v1835_v52, %v1061_v16  ;;  %v1080_v32 = vstv %s2410_s26  ;;  %s2486_s26 = sld [smem:[#allocation2 + $0x47]] }
  0xbd   : > { %v1055_v33 = vadd.f32 %v1050_v15, %v1012_v61  ;;  %v1064_v34 = vmul.f32 %v1836_v58, %v1061_v16  ;;  %v1065_v35 = vmul.f32 %v1837_v59, %v1061_v16  ;;  %v1066_v36 = vmul.f32 %v1838_v60, %v1061_v16 }
  0xbe   : > { %v1056_v38 = vadd.f32 %v1051_v19, %v1013_v62  ;;  %v1057_v39 = vadd.f32 %v1052_v20, %v1014_v1  ;;  %v1081_v40 = vmul.f32 %v1842_v25, %v1080_v32  ;;  %v1092_v41 = vstv %s2413_s27  ;;  %v1850_v1 = vld [vmem:[%s2145_s17 + $0x211] sm:$0xff]  ;;  %s2493_s27 = sld [smem:[#allocation2 + $0x1a]] }
  0xbf   : > { %v1058_v42 = vadd.f32 %v1053_v24, %v1015_v5  ;;  %v1082_v43 = vmul.f32 %v1843_v29, %v1080_v32  ;;  %v1083_v44 = vmul.f32 %v1844_v30, %v1080_v32  ;;  %v1084_v45 = vmul.f32 %v1845_v31, %v1080_v32 }
  0xc0   : > { %v1059_v46 = vadd.f32 %v1054_v26, %v1016_v9  ;;  %v1067_v47 = vadd.f32 %v1062_v27, %v1024_v10  ;;  %v1068_v48 = vadd.f32 %v1063_v28, %v1025_v11  ;;  %v1085_v49 = vmul.f32 %v1846_v37, %v1080_v32  ;;  %v1853_v9 = vld [vmem:[%s2145_s17 + $0x229] sm:$0xff]  ;;  %v1854_v10 = vld [vmem:[%s2145_s17 + $0x231] sm:$0xff] }
  0xc1   : > { %v1069_v50 = vadd.f32 %v1064_v34, %v1026_v12  ;;  %v1070_v51 = vadd.f32 %v1065_v35, %v1027_v13  ;;  %v1071_v52 = vadd.f32 %v1066_v36, %v1028_v14  ;;  %v1093_v53 = vmul.f32 %v1842_v25, %v1092_v41 }
  0xc2   : > { %v1086_v54 = vadd.f32 %v1081_v40, %v1043_v17  ;;  %v1094_v55 = vmul.f32 %v1843_v29, %v1092_v41  ;;  %v1095_v56 = vmul.f32 %v1844_v30, %v1092_v41  ;;  %v1104_v57 = vstv %s2416_s28  ;;  %s2496_s28 = sld [smem:[#allocation2 + $0x35]] }
  0xc3   : > { %v1087_v58 = vadd.f32 %v1082_v43, %v1044_v18  ;;  %v1088_v59 = vadd.f32 %v1083_v44, %v1045_v21  ;;  %v1089_v60 = vadd.f32 %v1084_v45, %v1046_v22  ;;  %v1096_v61 = vmul.f32 %v1845_v31, %v1092_v41  ;;  %v1860_v45 = vld [vmem:[%s2145_s17 + $0x279] sm:$0xff] }
  0xc4   : > { %v1090_v62 = vadd.f32 %v1085_v49, %v1047_v23  ;;  %v1097_v63 = vmul.f32 %v1846_v37, %v1092_v41  ;;  %v1105_v0 = vmul.f32 %v1842_v25, %v1104_v57  ;;  %v1123_v4 = vstv %s2423_s29  ;;  %s2504_s29 = sld [smem:[#allocation2 + $0x50]] }
  0xc5   : > { %v1098_v5 = vadd.f32 %v1093_v53, %v1055_v33  ;;  %v1106_v6 = vmul.f32 %v1843_v29, %v1104_v57  ;;  %v1107_v7 = vmul.f32 %v1844_v30, %v1104_v57  ;;  %v1108_v8 = vmul.f32 %v1845_v31, %v1104_v57 }
  0xc6   : > { %v1099_v11 = vadd.f32 %v1094_v55, %v1056_v38  ;;  %v1100_v12 = vadd.f32 %v1095_v56, %v1057_v39  ;;  %v1109_v13 = vmul.f32 %v1846_v37, %v1104_v57  ;;  %v1135_v14 = vstv %s2427_s30  ;;  %v1858_v38 = vld [vmem:[%s2145_s17 + $0x269] sm:$0xff]  ;;  %v1859_v39 = vld [vmem:[%s2145_s17 + $0x271] sm:$0xff]  ;;  %s2511_s30 = sld [smem:[#allocation4]] }
  0xc7   : > { %v1101_v15 = vadd.f32 %v1096_v61, %v1058_v42  ;;  %v1124_v16 = vmul.f32 %v1850_v1, %v1123_v4  ;;  %v1125_v17 = vmul.f32 %v1851_v2, %v1123_v4  ;;  %v1126_v18 = vmul.f32 %v1852_v3, %v1123_v4 }
  0xc8   : > { %v1102_v19 = vadd.f32 %v1097_v63, %v1059_v46  ;;  %v1110_v20 = vadd.f32 %v1105_v0, %v1067_v47  ;;  %v1127_v21 = vmul.f32 %v1853_v9, %v1123_v4  ;;  %v1128_v22 = vmul.f32 %v1854_v10, %v1123_v4  ;;  %v1861_v46 = vld [vmem:[%s2145_s17 + $0x281] sm:$0xff]  ;;  %v1862_v47 = vld [vmem:[%s2145_s17 + $0x289] sm:$0xff] }
  0xc9   : > { %v1111_v23 = vadd.f32 %v1106_v6, %v1068_v48  ;;  %v1112_v24 = vadd.f32 %v1107_v7, %v1069_v50  ;;  %v1113_v25 = vadd.f32 %v1108_v8, %v1070_v51  ;;  %v1136_v26 = vmul.f32 %v1850_v1, %v1135_v14 }
  0xca   : > { %v1114_v27 = vadd.f32 %v1109_v13, %v1071_v52  ;;  %v1137_v28 = vmul.f32 %v1851_v2, %v1135_v14  ;;  %v1138_v29 = vmul.f32 %v1852_v3, %v1135_v14  ;;  %v1147_v30 = vstv %s2430_s4  ;;  %s201_s4 = sand.u32 1, %s2036_s12   ;;  %s2521_s12 = sld [smem:[#allocation4 + $0x2]] }
  0xcb   : > { %v1129_v31 = vadd.f32 %v1124_v16, %v1086_v54  ;;  %v1130_v32 = vadd.f32 %v1125_v17, %v1087_v58  ;;  %v1131_v33 = vadd.f32 %v1126_v18, %v1088_v59  ;;  %v1139_v34 = vmul.f32 %v1853_v9, %v1135_v14  ;;  %v1868_v18 = vld [vmem:[%s2145_s17 + $0x2d1] sm:$0xff] }
  0xcc   : > { %v1132_v35 = vadd.f32 %v1127_v21, %v1089_v60  ;;  %v1133_v36 = vadd.f32 %v1128_v22, %v1090_v62  ;;  %v1140_v37 = vmul.f32 %v1854_v10, %v1135_v14  ;;  %v1166_v40 = vstv %s2436_s6  ;;  %s2516_s6 = sld [smem:[#allocation4 + $0x1]] }
  0xcd   : > { %v1141_v41 = vadd.f32 %v1136_v26, %v1098_v5  ;;  %v1148_v42 = vmul.f32 %v1850_v1, %v1147_v30  ;;  %v1149_v43 = vmul.f32 %v1851_v2, %v1147_v30  ;;  %v1150_v44 = vmul.f32 %v1852_v3, %v1147_v30 }
  0xce   : > { %v1142_v48 = vadd.f32 %v1137_v28, %v1099_v11  ;;  %v1143_v49 = vadd.f32 %v1138_v29, %v1100_v12  ;;  %v1151_v50 = vmul.f32 %v1853_v9, %v1147_v30  ;;  %v1152_v51 = vmul.f32 %v1854_v10, %v1147_v30  ;;  %v1866_v11 = vld [vmem:[%s2145_s17 + $0x2c1] sm:$0xff]  ;;  %v1867_v12 = vld [vmem:[%s2145_s17 + $0x2c9] sm:$0xff] }
  0xcf   : > { %v1144_v52 = vadd.f32 %v1139_v34, %v1101_v15  ;;  %v1167_v53 = vmul.f32 %v1858_v38, %v1166_v40  ;;  %v1168_v54 = vmul.f32 %v1859_v39, %v1166_v40  ;;  %v1178_v55 = vstv %s2441_s7  ;;  %s2518_s7 = smul.u32 120, %s201_s4 }
  0xd0   : > { %v1145_v56 = vadd.f32 %v1140_v37, %v1102_v19  ;;  %v1169_v57 = vmul.f32 %v1860_v45, %v1166_v40  ;;  %v1170_v58 = vmul.f32 %v1861_v46, %v1166_v40  ;;  %v1171_v59 = vmul.f32 %v1862_v47, %v1166_v40  ;;  %v1869_v19 = vld [vmem:[%s2145_s17 + $0x2d9] sm:$0xff] }
  0xd1   : > { %v1153_v60 = vadd.f32 %v1148_v42, %v1110_v20  ;;  %v1154_v61 = vadd.f32 %v1149_v43, %v1111_v23  ;;  %v1155_v62 = vadd.f32 %v1150_v44, %v1112_v24  ;;  %v1179_v63 = vmul.f32 %v1858_v38, %v1178_v55  ;;  %v1870_v20 = vld [vmem:[%s2145_s17 + $0x2e1] sm:$0xff] }
  0xd2   : > { %v1156_v0 = vadd.f32 %v1151_v50, %v1113_v25  ;;  %v1157_v1 = vadd.f32 %v1152_v51, %v1114_v27  ;;  %v1180_v2 = vmul.f32 %v1859_v39, %v1178_v55  ;;  %v1190_v3 = vstv %s2444_s8 }
  0xd3   : > { %v1172_v4 = vadd.f32 %v1167_v53, %v1129_v31  ;;  %v1173_v5 = vadd.f32 %v1168_v54, %v1130_v32  ;;  %v1181_v6 = vmul.f32 %v1860_v45, %v1178_v55  ;;  %v1182_v7 = vmul.f32 %v1861_v46, %v1178_v55 }
  0xd4   : > { %v1174_v8 = vadd.f32 %v1169_v57, %v1131_v33  ;;  %v1175_v9 = vadd.f32 %v1170_v58, %v1132_v35  ;;  %v1176_v10 = vadd.f32 %v1171_v59, %v1133_v36  ;;  %v1209_v13 = vstv %s2449_s9  ;;  %v1878_v57 = vld [vmem:[%s2145_s17 + $0x441] sm:$0xff] }
  0xd5   : > { %v1183_v14 = vmul.f32 %v1862_v47, %v1178_v55  ;;  %v1184_v15 = vadd.f32 %v1179_v63, %v1141_v41  ;;  %v1191_v16 = vmul.f32 %v1858_v38, %v1190_v3  ;;  %v1192_v17 = vmul.f32 %v1859_v39, %v1190_v3  ;;  %v1876_v55 = vld [vmem:[%s2145_s17 + $0x431] sm:$0xff] }
  0xd6   : > { %v1185_v21 = vadd.f32 %v1180_v2, %v1142_v48  ;;  %v1193_v22 = vmul.f32 %v1860_v45, %v1190_v3  ;;  %v1194_v23 = vmul.f32 %v1861_v46, %v1190_v3  ;;  %v1195_v24 = vmul.f32 %v1862_v47, %v1190_v3  ;;  %v1874_v48 = vld [vmem:[%s2145_s17 + $0x421] sm:$0xff] }
  0xd7   : > { %v1186_v25 = vadd.f32 %v1181_v6, %v1143_v49  ;;  %v1187_v26 = vadd.f32 %v1182_v7, %v1144_v52  ;;  %v1210_v27 = vmul.f32 %v1866_v11, %v1209_v13  ;;  %v1211_v28 = vmul.f32 %v1867_v12, %v1209_v13  ;;  %v1875_v49 = vld [vmem:[%s2145_s17 + $0x429] sm:$0xff] }
  0xd8   : > { %v1212_v29 = vmul.f32 %v1868_v18, %v1209_v13  ;;  %v1213_v30 = vmul.f32 %v1869_v19, %v1209_v13  ;;  %v1214_v31 = vmul.f32 %v1870_v20, %v1209_v13  ;;  %v1221_v32 = vstv %s2455_s10  ;;  %s1422_s10 = scalar_lea.vmem (%p2108_p3), %s2586_s3, %s212_s5 }
  0xd9   : > { %v1188_v33 = vadd.f32 %v1183_v14, %v1145_v56  ;;  %v1196_v34 = vadd.f32 %v1191_v16, %v1153_v60  ;;  %v1197_v35 = vadd.f32 %v1192_v17, %v1154_v61  ;;  %v1222_v36 = vmul.f32 %v1866_v11, %v1221_v32  ;;  %v1877_v56 = vld [vmem:[%s2145_s17 + $0x439] sm:$0xff] }
  0xda   : > { %v1198_v37 = vadd.f32 %v1193_v22, %v1155_v62  ;;  %v1199_v38 = vadd.f32 %v1194_v23, %v1156_v0  ;;  %v1200_v39 = vadd.f32 %v1195_v24, %v1157_v1  ;;  %v1233_v40 = vstv %s2458_s11  ;;  %v1882_v22 = vld [vmem:[%s2145_s17 + $0x479] sm:$0xff] }
  0xdb   : > { %v1215_v41 = vadd.f32 %v1210_v27, %v1172_v4  ;;  %v1216_v42 = vadd.f32 %v1211_v28, %v1173_v5  ;;  %v1223_v43 = vmul.f32 %v1867_v12, %v1221_v32  ;;  %v1224_v44 = vmul.f32 %v1868_v18, %v1221_v32  ;;  %v1884_v27 = vld [vmem:[%s2145_s17 + $0x489] sm:$0xff]  ;;  %v1885_v28 = vld [vmem:[%s2145_s17 + $0x491] sm:$0xff] }
  0xdc   : > { %v1217_v45 = vadd.f32 %v1212_v29, %v1174_v8  ;;  %v1218_v46 = vadd.f32 %v1213_v30, %v1175_v9  ;;  %v1219_v47 = vadd.f32 %v1214_v31, %v1176_v10  ;;  %v1252_v50 = vstv %s2463_s19 }
  0xdd   : > { %v1225_v51 = vmul.f32 %v1869_v19, %v1221_v32  ;;  %v1226_v52 = vmul.f32 %v1870_v20, %v1221_v32  ;;  %v1227_v53 = vadd.f32 %v1222_v36, %v1184_v15  ;;  %v1234_v54 = vmul.f32 %v1866_v11, %v1233_v40 }
  0xde   : > { %v1235_v58 = vmul.f32 %v1867_v12, %v1233_v40  ;;  %v1236_v59 = vmul.f32 %v1868_v18, %v1233_v40  ;;  %v1237_v60 = vmul.f32 %v1869_v19, %v1233_v40  ;;  %v1238_v61 = vmul.f32 %v1870_v20, %v1233_v40 }
  0xdf   : > { %v1228_v62 = vadd.f32 %v1223_v43, %v1185_v21  ;;  %v1229_v63 = vadd.f32 %v1224_v44, %v1186_v25  ;;  %v1253_v0 = vmul.f32 %v1874_v48, %v1252_v50  ;;  %v1264_v1 = vstv %s2468_s21 }
  0xe0   : > { %v1254_v2 = vmul.f32 %v1875_v49, %v1252_v50  ;;  %v1255_v3 = vmul.f32 %v1876_v55, %v1252_v50  ;;  %v1256_v4 = vmul.f32 %v1877_v56, %v1252_v50  ;;  %v1257_v5 = vmul.f32 %v1878_v57, %v1252_v50 }
  0xe1   : > { %v1230_v6 = vadd.f32 %v1225_v51, %v1187_v26  ;;  %v1231_v7 = vadd.f32 %v1226_v52, %v1188_v33  ;;  %v1239_v8 = vadd.f32 %v1234_v54, %v1196_v34  ;;  %v1265_v9 = vmul.f32 %v1874_v48, %v1264_v1  ;;  %v1883_v26 = vld [vmem:[%s2145_s17 + $0x481] sm:$0xff]  ;;  %v1886_v34 = vld [vmem:[%s2145_s17 + $0x499] sm:$0xff] }
  0xe2   : > { %v1240_v10 = vadd.f32 %v1235_v58, %v1197_v35  ;;  %v1241_v11 = vadd.f32 %v1236_v59, %v1198_v37  ;;  %v1242_v12 = vadd.f32 %v1237_v60, %v1199_v38  ;;  %v1243_v13 = vadd.f32 %v1238_v61, %v1200_v39  ;;  %v1890_v59 = vld [vmem:[%s2145_s17 + $0x4d1] sm:$0xff]  ;;  %v1891_v60 = vld [vmem:[%s2145_s17 + $0x4d9] sm:$0xff] }
  0xe3   : > { %v1258_v14 = vadd.f32 %v1253_v0, %v1215_v41  ;;  %v1266_v15 = vmul.f32 %v1875_v49, %v1264_v1  ;;  %v1267_v16 = vmul.f32 %v1876_v55, %v1264_v1  ;;  %v1276_v17 = vstv %s2472_s22 }
  0xe4   : > { %v1259_v18 = vadd.f32 %v1254_v2, %v1216_v42  ;;  %v1260_v19 = vadd.f32 %v1255_v3, %v1217_v45  ;;  %v1261_v20 = vadd.f32 %v1256_v4, %v1218_v46  ;;  %v1262_v21 = vadd.f32 %v1257_v5, %v1219_v47  ;;  %v1893_v2 = vld [vmem:[%s2145_s17 + $0x4e9] sm:$0xff]  ;;  %v1894_v3 = vld [vmem:[%s2145_s17 + $0x4f1] sm:$0xff] }
  0xe5   : > { %v1268_v23 = vmul.f32 %v1877_v56, %v1264_v1  ;;  %v1269_v24 = vmul.f32 %v1878_v57, %v1264_v1  ;;  %v1270_v25 = vadd.f32 %v1265_v9, %v1227_v53  ;;  %v1295_v29 = vstv %s2480_s24  ;;  %v1892_v1 = vld [vmem:[%s2145_s17 + $0x4e1] sm:$0xff]  ;;  %s2525_s17 = scalar_lea.vmem [#allocation6], %s2518_s7 }
  0xe6   : > { %v1277_v30 = vmul.f32 %v1874_v48, %v1276_v17  ;;  %v1278_v31 = vmul.f32 %v1875_v49, %v1276_v17  ;;  %v1279_v32 = vmul.f32 %v1876_v55, %v1276_v17  ;;  %v1280_v33 = vmul.f32 %v1877_v56, %v1276_v17 }
  0xe7   : > { %v1271_v35 = vadd.f32 %v1266_v15, %v1228_v62  ;;  %v1272_v36 = vadd.f32 %v1267_v16, %v1229_v63  ;;  %v1281_v37 = vmul.f32 %v1878_v57, %v1276_v17  ;;  %v1296_v38 = vmul.f32 %v1882_v22, %v1295_v29 }
  0xe8   : > { %v1297_v39 = vmul.f32 %v1883_v26, %v1295_v29  ;;  %v1298_v40 = vmul.f32 %v1884_v27, %v1295_v29  ;;  %v1299_v41 = vmul.f32 %v1885_v28, %v1295_v29  ;;  %v1307_v42 = vstv %s2483_s25 }
  0xe9   : > { %v1273_v43 = vadd.f32 %v1268_v23, %v1230_v6  ;;  %v1274_v44 = vadd.f32 %v1269_v24, %v1231_v7  ;;  %v1300_v45 = vmul.f32 %v1886_v34, %v1295_v29  ;;  %v1308_v46 = vmul.f32 %v1882_v22, %v1307_v42 }
  0xea   : > { %v1282_v47 = vadd.f32 %v1277_v30, %v1239_v8  ;;  %v1283_v48 = vadd.f32 %v1278_v31, %v1240_v10  ;;  %v1284_v49 = vadd.f32 %v1279_v32, %v1241_v11  ;;  %v2499_v50 = vadd.f32 %v1280_v33, %v1242_v12 }
  0xeb   : > { %v2501_v51 = vadd.f32 %v1281_v37, %v1243_v13  ;;  %v1301_v52 = vadd.f32 %v1296_v38, %v1258_v14  ;;  %v1309_v53 = vmul.f32 %v1883_v26, %v1307_v42  ;;  %v1319_v54 = vstv %s2486_s26 }
  0xec   : > { %v1302_v55 = vadd.f32 %v1297_v39, %v1259_v18  ;;  %v1303_v56 = vadd.f32 %v1298_v40, %v1260_v19  ;;  %v1304_v57 = vadd.f32 %v1299_v41, %v1261_v20  ;;  %v1310_v58 = vmul.f32 %v1884_v27, %v1307_v42 }
  0xed   : > { %v1305_v61 = vadd.f32 %v1300_v45, %v1262_v21  ;;  %v1311_v62 = vmul.f32 %v1885_v28, %v1307_v42  ;;  %v1312_v63 = vmul.f32 %v1886_v34, %v1307_v42  ;;  %v1313_v0 = vadd.f32 %v1308_v46, %v1270_v25 }
  0xee   : > { %v1320_v4 = vmul.f32 %v1882_v22, %v1319_v54  ;;  %v1321_v5 = vmul.f32 %v1883_v26, %v1319_v54  ;;  %v1338_v6 = vstv %s2493_s27  ;;  %v1350_v7 = vstv %s2496_s28 }
  0xef   : > { %v1314_v8 = vadd.f32 %v1309_v53, %v1271_v35  ;;  %v1322_v9 = vmul.f32 %v1884_v27, %v1319_v54  ;;  %v1339_v10 = vmul.f32 %v1890_v59, %v1338_v6  ;;  %v1340_v11 = vmul.f32 %v1891_v60, %v1338_v6 }
  0xf0   : > { %v1315_v12 = vadd.f32 %v1310_v58, %v1272_v36  ;;  %v1341_v13 = vmul.f32 %v1892_v1, %v1338_v6  ;;  %v1342_v14 = vmul.f32 %v1893_v2, %v1338_v6  ;;  %v1343_v15 = vmul.f32 %v1894_v3, %v1338_v6 }
  0xf1   : > { %v1316_v16 = vadd.f32 %v1311_v62, %v1273_v43  ;;  %v1317_v17 = vadd.f32 %v1312_v63, %v1274_v44  ;;  %v1323_v18 = vmul.f32 %v1885_v28, %v1319_v54  ;;  %v1351_v19 = vmul.f32 %v1890_v59, %v1350_v7 }
  0xf2   : > { %v1324_v20 = vmul.f32 %v1886_v34, %v1319_v54  ;;  %v1344_v21 = vadd.f32 %v1339_v10, %v1301_v52  ;;  %v1352_v22 = vmul.f32 %v1891_v60, %v1350_v7  ;;  %v1353_v23 = vmul.f32 %v1892_v1, %v1350_v7 }
  0xf3   : > { %v1345_v24 = vadd.f32 %v1340_v11, %v1302_v55  ;;  %v1346_v25 = vadd.f32 %v1341_v13, %v1303_v56  ;;  %v1354_v26 = vmul.f32 %v1893_v2, %v1350_v7  ;;  %v1362_v27 = vstv %s2504_s29 }
  0xf4   : > { %v1325_v29 = vadd.f32 %v1320_v4, %v1282_v47  ;;  %v1326_v30 = vadd.f32 %v1321_v5, %v1283_v48  ;;  %v1347_v31 = vadd.f32 %v1342_v14, %v1304_v57  ;;  %v1348_v32 = vadd.f32 %v1343_v15, %v1305_v61 }
  0xf5   : > { %v1327_v33 = vadd.f32 %v1322_v9, %v1284_v49  ;;  %v1355_v35 = vmul.f32 %v1894_v3, %v1350_v7  ;;  %v1356_v28 = vadd.f32 %v1351_v19, %v1313_v0  ;;  %v1374_v34 = vstv %s2511_s30 }
  0xf6   : > { %v1357_v36 = vadd.f32 %v1352_v22, %v1314_v8  ;;  %v1358_v37 = vadd.f32 %v1353_v23, %v1315_v12  ;;  %v1363_v38 = vmul.f32 %v1890_v59, %v1362_v27  ;;  %v1375_v39 = vadd.f32 %v1374_v34, %v1344_v21 }
  0xf7   : > { %v1359_v40 = vadd.f32 %v1354_v26, %v1316_v16  ;;  %v1364_v41 = vmul.f32 %v1891_v60, %v1362_v27  ;;  %v1376_v42 = vadd.f32 %v1374_v34, %v1345_v24  ;;  %v1377_v43 = vadd.f32 %v1374_v34, %v1346_v25 }
  0xf8   : > { %v1365_v44 = vmul.f32 %v1892_v1, %v1362_v27  ;;  %v1378_v45 = vadd.f32 %v1374_v34, %v1347_v31  ;;  %v1379_v46 = vadd.f32 %v1374_v34, %v1348_v32  ;;  %1380 = vst [vmem:[%s2525_s17] sm:$0xff] %v1375_v39  ;;  %v1386_v47 = vstv %s2516_s6 }
  0xf9   : > { %v1328_v48 = vadd.f32 %v1323_v18, %v2499_v50  ;;  %v1360_v49 = vadd.f32 %v1355_v35, %v1317_v17  ;;  %v1366_v52 = vmul.f32 %v1893_v2, %v1362_v27  ;;  %1381 = vst [vmem:[%s2525_s17 + $0x8] sm:$0xff] %v1376_v42  ;;  %v1387_v53 = vadd.f32 %v1386_v47, %v1356_v28 }
  0xfa   : > { %v1329_v54 = vadd.f32 %v1324_v20, %v2501_v51  ;;  %v1367_v55 = vmul.f32 %v1894_v3, %v1362_v27  ;;  %v1368_v56 = vadd.f32 %v1363_v38, %v1325_v29  ;;  %1382 = vst [vmem:[%s2525_s17 + $0x10] sm:$0xff] %v1377_v43  ;;  %v1388_v57 = vadd.f32 %v1386_v47, %v1357_v36 }
  0xfb   : > { %v1369_v58 = vadd.f32 %v1364_v41, %v1326_v30  ;;  %1383 = vst [vmem:[%s2525_s17 + $0x18] sm:$0xff] %v1378_v45  ;;  %v1389_v59 = vadd.f32 %v1386_v47, %v1358_v37  ;;  %v1399_v60 = vstv %s2521_s12  ;;  %v1370_v50 = vadd.f32 %v1365_v44, %v1327_v33 }
  0xfc   : > { %1384 = vst [vmem:[%s2525_s17 + $0x20] sm:$0xff] %v1379_v46  ;;  %v1390_v61 = vadd.f32 %v1386_v47, %v1359_v40  ;;  %v1371_v62 = vadd.f32 %v1366_v52, %v1328_v48  ;;  %v1391_v51 = vadd.f32 %v1386_v47, %v1360_v49  ;;  %v1372_v63 = vadd.f32 %v1367_v55, %v1329_v54 }
  0xfd   : > { %1899 = vst [vmem:[%s2525_s17 + $0x28] sm:$0xff] %v1387_v53  ;;  %v1400_v0 = vadd.f32 %v1399_v60, %v1368_v56  ;;  %v1401_v1 = vadd.f32 %v1399_v60, %v1369_v58  ;;  %v1402_v2 = vadd.f32 %v1399_v60, %v1370_v50 }
  0xfe   : > { %1900 = vst [vmem:[%s2525_s17 + $0x30] sm:$0xff] %v1388_v57  ;;  %v1403_v3 = vadd.f32 %v1399_v60, %v1371_v62  ;;  %v1404_v4 = vadd.f32 %v1399_v60, %v1372_v63 }
  0xff   : > { %1901 = vst [vmem:[%s2525_s17 + $0x38] sm:$0xff] %v1389_v59  ;;  %v1479_v5 = vld [vmem:[%s2525_s17] sm:$0xff] (%p2108_p3) }
 0x100   : > { %1902 = vst [vmem:[%s2525_s17 + $0x40] sm:$0xff] %v1390_v61  ;;  %v1481_v6 = vld [vmem:[%s2525_s17 + $0x8] sm:$0xff] (%p2108_p3) }
 0x101   : > { %1903 = vst [vmem:[%s2525_s17 + $0x48] sm:$0xff] %v1391_v51  ;;  %v1483_v7 = vld [vmem:[%s2525_s17 + $0x10] sm:$0xff] (%p2108_p3) }
 0x102   : > { %1905 = vst [vmem:[%s2525_s17 + $0x50] sm:$0xff] %v1400_v0  ;;  %1417 = sbr.rel (!%p2108_p3) target bundleno = 278 (0x116), region = 44  ;;  %v1485_v8 = vld [vmem:[%s2525_s17 + $0x18] sm:$0xff] (%p2108_p3) }
 0x103   : > { %1906 = vst [vmem:[%s2525_s17 + $0x58] sm:$0xff] %v1401_v1  ;;  %v1487_v9 = vld [vmem:[%s2525_s17 + $0x20] sm:$0xff] (%p2108_p3) }
 0x104   : > { %1907 = vst [vmem:[%s2525_s17 + $0x60] sm:$0xff] %v1402_v2  ;;  %v1489_v10 = vld [vmem:[%s2525_s17 + $0x28] sm:$0xff] (%p2108_p3) }
 0x105   : > { %1908 = vst [vmem:[%s2525_s17 + $0x68] sm:$0xff] %v1403_v3  ;;  %v1491_v11 = vld [vmem:[%s2525_s17 + $0x30] sm:$0xff] (%p2108_p3) }
 0x106   : > { %1909 = vst [vmem:[%s2525_s17 + $0x70] sm:$0xff] %v1404_v4  ;;  %v1493_v12 = vld [vmem:[%s2525_s17 + $0x38] sm:$0xff] (%p2108_p3) }
 0x107   : > { %1480 = vst [vmem:[%s1422_s10] sm:$0xff] %v1479_v5  ;;  %v1495_v13 = vld [vmem:[%s2525_s17 + $0x40] sm:$0xff] }
 0x108   : > { %1482 = vst [vmem:[%s1422_s10 + $0x8] sm:$0xff] %v1481_v6  ;;  %v1497_v14 = vld [vmem:[%s2525_s17 + $0x48] sm:$0xff] }
 0x109   : > { %1484 = vst [vmem:[%s1422_s10 + $0x10] sm:$0xff] %v1483_v7  ;;  %v1499_v15 = vld [vmem:[%s2525_s17 + $0x50] sm:$0xff] }
 0x10a   : > { %1486 = vst [vmem:[%s1422_s10 + $0x18] sm:$0xff] %v1485_v8  ;;  %v1501_v16 = vld [vmem:[%s2525_s17 + $0x58] sm:$0xff] }
 0x10b   : > { %1488 = vst [vmem:[%s1422_s10 + $0x20] sm:$0xff] %v1487_v9  ;;  %v1503_v17 = vld [vmem:[%s2525_s17 + $0x60] sm:$0xff] }
 0x10c   : > { %1490 = vst [vmem:[%s1422_s10 + $0x50] sm:$0xff] %v1489_v10  ;;  %v1505_v18 = vld [vmem:[%s2525_s17 + $0x68] sm:$0xff] }
 0x10d   : > { %1492 = vst [vmem:[%s1422_s10 + $0x58] sm:$0xff] %v1491_v11  ;;  %v1507_v19 = vld [vmem:[%s2525_s17 + $0x70] sm:$0xff] }
 0x10e   : > { %1494 = vst [vmem:[%s1422_s10 + $0x60] sm:$0xff] %v1493_v12 }
 0x10f   : > { %1496 = vst [vmem:[%s1422_s10 + $0x68] sm:$0xff] %v1495_v13 }
 0x110   : > { %1498 = vst [vmem:[%s1422_s10 + $0x70] sm:$0xff] %v1497_v14 }
 0x111   : > { %1500 = vst [vmem:[%s1422_s10 + $0xa0] sm:$0xff] %v1499_v15 }
 0x112   : > { %1502 = vst [vmem:[%s1422_s10 + $0xa8] sm:$0xff] %v1501_v16 }
 0x113   : > { %1504 = vst [vmem:[%s1422_s10 + $0xb0] sm:$0xff] %v1503_v17 }
 0x114   : > { %1506 = vst [vmem:[%s1422_s10 + $0xb8] sm:$0xff] %v1505_v18 }
 0x115   : > { %1508 = vst [vmem:[%s1422_s10 + $0xc0] sm:$0xff] %v1507_v19 }
 0x116 PF: > { %s15_s16 = sadd.s32 1, %s2052_s16   ;;  %s2589_s12 = smov %s2040_s13 }
 0x117   : > { %p12_p11 = scmp.ge.s32.totalorder %s15_s16, 4   ;;  %s2590_s13 = smov %s2121_s23 }
 0x118   : > { %s2591_s14 = smov %s2048_s15  ;;  %s2592_s15 = smov %s2594_s18 }
 0x119   :  { %14 = sbr.rel (!%p12_p11) target bundleno = 4 (0x4), region = 138 }
 0x11e   :  { %1524 = vsyncpa [#allocation3], 1 }
 0x11f   :  { %1526 = vsyncpa [#allocation3 + $0x1], 1 }
 0x120   :  { %1527 = vsyncpa [#allocation5], 1 }

</bundles_post_ra>
